<compile_context>
chip_gen: v5e
topology: v5e:2x2
jax: 0.10.0
libtpu: 0.0.40
codegen_flags: <defaults>
</compile_context>

<pallas_src>
import functools

import jax
import jax.numpy as jnp
from jax.experimental import pallas as pl
from jax.experimental.pallas import tpu as pltpu


# ----------------------------------------------------------------------------
# Small helpers
# ----------------------------------------------------------------------------
def _round_up(x, m):
    return ((x + m - 1) // m) * m


def _row_tile(m, cap=256):
    """Row tile: multiple of 8, <= cap, aims for >=2 grid blocks (v7x megacore)."""
    tm = _round_up(max(1, (m + 1) // 2), 8)
    return max(8, min(tm, cap, _round_up(m, 8)))


# ----------------------------------------------------------------------------
# Pallas kernels
# ----------------------------------------------------------------------------
def _conv_gemm_kernel(*refs, m_total, tm, has_residual, want_stats, fuse_act):
    """out = act(A) @ W + bias (+ residual); optional per-tile channel sum/sumsq.

    If fuse_act: A arrives in f32 and `max(A*scale + shift, 0)` (a BatchNorm
    apply + ReLU) is computed in-register, cast to bf16 and fed to the MXU.
    """
    idx = 0
    a_ref = refs[idx]; idx += 1
    w_ref = refs[idx]; idx += 1
    b_ref = refs[idx]; idx += 1
    asc_ref = ash_ref = None
    if fuse_act:
        asc_ref = refs[idx]; idx += 1
        ash_ref = refs[idx]; idx += 1
    r_ref = None
    if has_residual:
        r_ref = refs[idx]; idx += 1
    out_ref = refs[idx]; idx += 1
    if want_stats:
        ps_ref = refs[idx]; idx += 1
        pq_ref = refs[idx]; idx += 1

    if fuse_act:
        a = jnp.maximum(a_ref[...] * asc_ref[...] + ash_ref[...], 0.0)
        a = a.astype(jnp.bfloat16)
    else:
        a = a_ref[...]

    acc = jnp.dot(a, w_ref[...], preferred_element_type=jnp.float32)
    acc = acc + b_ref[...]
    if has_residual:
        acc = acc + r_ref[...]
    out_ref[...] = acc

    if want_stats:
        # Mask rows of a (possibly) ragged last tile so OOB garbage never
        # contaminates the batch statistics.
        i = pl.program_id(0)
        rows_left = m_total - i * tm
        row_id = jax.lax.broadcasted_iota(jnp.int32, (tm, 1), 0)
        x = jnp.where(row_id < rows_left, acc, 0.0)
        ps_ref[...] = jnp.sum(x, axis=0, keepdims=True)[None]
        pq_ref[...] = jnp.sum(x * x, axis=0, keepdims=True)[None]


def _bn_relu_kernel(x_ref, scale_ref, shift_ref, o_ref):
    y = jnp.maximum(x_ref[...] * scale_ref[...] + shift_ref[...], 0.0)
    o_ref[...] = y.astype(o_ref.dtype)


# ----------------------------------------------------------------------------
# Pallas wrappers
# ----------------------------------------------------------------------------
def pallas_conv_gemm(a, w, bias, residual=None, want_stats=False,
                     act_scale=None, act_shift=None):
    """(M,K) @ (K,N) + bias [+ residual] with bf16 MXU inputs / f32 accumulation.

    act_scale/act_shift: per-K-column BN scale/shift; BN+ReLU is applied to A
    inside the kernel (A is then taken as f32).
    If want_stats, also returns per-channel sum / sum-of-squares of the f32
    output (fused into the GEMM epilogue, one HBM pass).
    """
    fuse_act = act_scale is not None
    m, k = a.shape
    n = w.shape[1]
    tm = _row_tile(m)
    grid_m = pl.cdiv(m, tm)

    a_in = a.astype(jnp.float32) if fuse_act else a.astype(jnp.bfloat16)
    w_bf = w.astype(jnp.bfloat16)
    b2 = bias.reshape(1, n).astype(jnp.float32)

    in_specs = [
        pl.BlockSpec((tm, k), lambda i: (i, 0)),
        pl.BlockSpec((k, n), lambda i: (0, 0)),
        pl.BlockSpec((1, n), lambda i: (0, 0)),
    ]
    args = [a_in, w_bf, b2]
    if fuse_act:
        in_specs += [pl.BlockSpec((1, k), lambda i: (0, 0)),
                     pl.BlockSpec((1, k), lambda i: (0, 0))]
        args += [act_scale.reshape(1, k).astype(jnp.float32),
                 act_shift.reshape(1, k).astype(jnp.float32)]
    if residual is not None:
        in_specs.append(pl.BlockSpec((tm, n), lambda i: (i, 0)))
        args.append(residual.astype(jnp.float32))

    kernel = functools.partial(
        _conv_gemm_kernel,
        m_total=m,
        tm=tm,
        has_residual=residual is not None,
        want_stats=want_stats,
        fuse_act=fuse_act,
    )
    params = pltpu.CompilerParams(dimension_semantics=("parallel",))

    if want_stats:
        out_shape = (
            jax.ShapeDtypeStruct((m, n), jnp.float32),
            jax.ShapeDtypeStruct((grid_m, 1, n), jnp.float32),
            jax.ShapeDtypeStruct((grid_m, 1, n), jnp.float32),
        )
        out_specs = (
            pl.BlockSpec((tm, n), lambda i: (i, 0)),
            pl.BlockSpec((1, 1, n), lambda i: (i, 0, 0)),
            pl.BlockSpec((1, 1, n), lambda i: (i, 0, 0)),
        )
        out, psum, psq = pl.pallas_call(
            kernel,
            out_shape=out_shape,
            grid=(grid_m,),
            in_specs=in_specs,
            out_specs=out_specs,
            compiler_params=params,
        )(*args)
        return out, jnp.sum(psum, axis=0)[0], jnp.sum(psq, axis=0)[0]

    out = pl.pallas_call(
        kernel,
        out_shape=jax.ShapeDtypeStruct((m, n), jnp.float32),
        grid=(grid_m,),
        in_specs=in_specs,
        out_specs=pl.BlockSpec((tm, n), lambda i: (i, 0)),
        compiler_params=params,
    )(*args)
    return out


def pallas_bn_relu(x2d, scale, shift, out_dtype=jnp.bfloat16):
    """y = max(x * scale + shift, 0), per-channel; lane-dense folded stores."""
    m, c = x2d.shape

    # Lane folding: present >=128 lanes to the store path when C < 128.
    fold = 1
    if c < 128:
        f = max(1, 128 // c)
        while f > 1 and (m % f) != 0:
            f //= 2
        fold = f
    mf, cf = m // fold, c * fold

    xf = x2d.reshape(mf, cf)                       # row-major view, free
    scale_f = jnp.tile(scale.astype(jnp.float32), fold).reshape(1, cf)
    shift_f = jnp.tile(shift.astype(jnp.float32), fold).reshape(1, cf)

    tm = _row_tile(mf)
    out = pl.pallas_call(
        _bn_relu_kernel,
        out_shape=jax.ShapeDtypeStruct((mf, cf), out_dtype),
        grid=(pl.cdiv(mf, tm),),
        in_specs=[
            pl.BlockSpec((tm, cf), lambda i: (i, 0)),
            pl.BlockSpec((1, cf), lambda i: (0, 0)),
            pl.BlockSpec((1, cf), lambda i: (0, 0)),
        ],
        out_specs=pl.BlockSpec((tm, cf), lambda i: (i, 0)),
        compiler_params=pltpu.CompilerParams(dimension_semantics=("parallel",)),
    )(xf, scale_f, shift_f)
    return out.reshape(m, c)


# ----------------------------------------------------------------------------
# Layer glue (JAX around the Pallas kernels)
# ----------------------------------------------------------------------------
def _im2col(x_nhwc, k, stride, pad):
    # TODO(synk): replace HBM-materialized im2col with an in-kernel tap loop
    # (grid axis over k*k taps + VMEM f32 accumulator); strided (stride=2) tap
    # windows are not expressible with a plain BlockSpec index_map, so the
    # gather currently stays in XLA (now on bf16 data => half the traffic).
    n, h, w, c = x_nhwc.shape
    if k == 1 and stride == 1 and pad == 0:
        return x_nhwc.reshape(n * h * w, c), (n, h, w)
    xp = jnp.pad(x_nhwc, ((0, 0), (pad, pad), (pad, pad), (0, 0)))
    ho = (h + 2 * pad - k) // stride + 1
    wo = (w + 2 * pad - k) // stride + 1
    cols = []
    for di in range(k):
        for dj in range(k):
            cols.append(
                xp[:, di: di + ho * stride: stride, dj: dj + wo * stride: stride, :]
            )
    patches = jnp.stack(cols, axis=-2)  # [N, Ho, Wo, k*k, Cin], (kh, kw) major
    return patches.reshape(n * ho * wo, k * k * c), (n, ho, wo)


def conv2d(x_nhwc, w_oihw, bias, k, stride, pad, residual_nhwc=None,
           want_stats=False, act_scale=None, act_shift=None):
    cout, cin = w_oihw.shape[0], w_oihw.shape[1]
    if act_scale is not None:
        assert k == 1 and pad == 0, "activation fusion only for unpadded 1x1 convs"
    patches, (n, ho, wo) = _im2col(x_nhwc, k, stride, pad)
    w_mat = jnp.transpose(w_oihw, (2, 3, 1, 0)).reshape(k * k * cin, cout)
    res2d = residual_nhwc.reshape(-1, cout) if residual_nhwc is not None else None
    if want_stats:
        out, s, sq = pallas_conv_gemm(patches, w_mat, bias, residual=res2d,
                                      want_stats=True,
                                      act_scale=act_scale, act_shift=act_shift)
        return out.reshape(n, ho, wo, cout), s, sq
    out = pallas_conv_gemm(patches, w_mat, bias, residual=res2d, want_stats=False,
                           act_scale=act_scale, act_shift=act_shift)
    return out.reshape(n, ho, wo, cout)


def _bn_scale_shift(s, sq, count, gamma, beta, eps=1e-5):
    # One-pass (shifted) moments from the fused GEMM epilogue; clamp variance
    # at 0 to guard against cancellation.  PyTorch train-mode: biased variance.
    mean = s / count
    var = jnp.maximum(sq / count - mean * mean, 0.0)
    scale = gamma / jnp.sqrt(var + eps)
    shift = beta - mean * scale
    return scale, shift


def _apply_bn_relu(y_nhwc, scale, shift):
    n, h, w, c = y_nhwc.shape
    return pallas_bn_relu(y_nhwc.reshape(-1, c), scale, shift).reshape(n, h, w, c)


# ----------------------------------------------------------------------------
# Parameters + forward
# ----------------------------------------------------------------------------
def init_params(key, in_channels, dim):
    ks = jax.random.split(key, 12)

    def conv_p(k1, cout, cin, ksz):
        w = jax.random.normal(k1, (cout, cin, ksz, ksz), jnp.float32) * (
            1.0 / (ksz * ksz * cin) ** 0.5
        )
        b = jnp.zeros((cout,), jnp.float32)
        return w, b

    def bn_p(k1, c):
        g = 1.0 + 0.1 * jax.random.normal(k1, (c,), jnp.float32)
        b = 0.1 * jax.random.normal(jax.random.fold_in(k1, 1), (c,), jnp.float32)
        return g, b

    p = {}
    p["conv1_w"], p["conv1_b"] = conv_p(ks[0], dim, in_channels, 4)
    p["bn1_g"], p["bn1_b"] = bn_p(ks[1], dim)
    p["conv2_w"], p["conv2_b"] = conv_p(ks[2], dim, dim, 4)
    for i, rb in enumerate(("rb1", "rb2")):
        base = 3 + 4 * i
        p[f"{rb}_bn1_g"], p[f"{rb}_bn1_b"] = bn_p(ks[base], dim)
        p[f"{rb}_conv1_w"], p[f"{rb}_conv1_b"] = conv_p(ks[base + 1], dim, dim, 3)
        p[f"{rb}_bn2_g"], p[f"{rb}_bn2_b"] = bn_p(ks[base + 2], dim)
        p[f"{rb}_conv2_w"], p[f"{rb}_conv2_b"] = conv_p(ks[base + 3], dim, dim, 1)
    return p


def encoder_forward(x_nchw, p, eps=1e-5):
    x = jnp.transpose(x_nchw, (0, 2, 3, 1))  # NCHW -> NHWC

    # conv1 (fused BN1 stats) -> BN1 + ReLU (bf16 out feeds padded conv2)
    y, s, sq = conv2d(x, p["conv1_w"], p["conv1_b"], 4, 2, 1, want_stats=True)
    cnt = jnp.float32(y.shape[0] * y.shape[1] * y.shape[2])
    scale, shift = _bn_scale_shift(s, sq, cnt, p["bn1_g"], p["bn1_b"], eps)
    a = _apply_bn_relu(y, scale, shift)

    # conv2 (fused stats feed rb1.bn1)
    x, s, sq = conv2d(a, p["conv2_w"], p["conv2_b"], 4, 2, 1, want_stats=True)

    for rb in ("rb1", "rb2"):
        # BN1 + ReLU (separate kernel: its consumer is a padded 3x3 conv, so
        # zero padding must happen in the activated domain).
        cnt = jnp.float32(x.shape[0] * x.shape[1] * x.shape[2])
        scale, shift = _bn_scale_shift(s, sq, cnt,
                                       p[f"{rb}_bn1_g"], p[f"{rb}_bn1_b"], eps)
        h = _apply_bn_relu(x, scale, shift)

        # 3x3 conv (fused stats feed this block's bn2)
        h, s2, sq2 = conv2d(h, p[f"{rb}_conv1_w"], p[f"{rb}_conv1_b"], 3, 1, 1,
                            want_stats=True)
        cnt2 = jnp.float32(h.shape[0] * h.shape[1] * h.shape[2])
        scale2, shift2 = _bn_scale_shift(s2, sq2, cnt2,
                                         p[f"{rb}_bn2_g"], p[f"{rb}_bn2_b"], eps)

        # BN2 + ReLU fused INTO the 1x1 conv GEMM (+ residual add).  Stats are
        # emitted only when another BN consumes the result.
        if rb == "rb2":
            x = conv2d(h, p[f"{rb}_conv2_w"], p[f"{rb}_conv2_b"], 1, 1, 0,
                       residual_nhwc=x, want_stats=False,
                       act_scale=scale2, act_shift=shift2)
        else:
            x, s, sq = conv2d(h, p[f"{rb}_conv2_w"], p[f"{rb}_conv2_b"], 1, 1, 0,
                              residual_nhwc=x, want_stats=True,
                              act_scale=scale2, act_shift=shift2)

    return jnp.transpose(x, (0, 3, 1, 2))  # NHWC -> NCHW


# ----------------------------------------------------------------------------
# Reference path (XLA convs; same bf16-input / f32-accumulate contract)
# ----------------------------------------------------------------------------
def _ref_conv(x_nhwc, w_oihw, b, stride, pad, residual=None):
    w_hwio = jnp.transpose(w_oihw, (2, 3, 1, 0))
    y = jax.lax.conv_general_dilated(
        x_nhwc.astype(jnp.bfloat16), w_hwio.astype(jnp.bfloat16),
        (stride, stride), [(pad, pad), (pad, pad)],
        dimension_numbers=("NHWC", "HWIO", "NHWC"),
        preferred_element_type=jnp.float32,
    ) + b
    return y if residual is None else y + residual


def _ref_bn_relu(x, g, b, eps=1e-5):
    m = jnp.mean(x, axis=(0, 1, 2))
    v = jnp.mean((x - m) ** 2, axis=(0, 1, 2))
    return jnp.maximum((x - m) / jnp.sqrt(v + eps) * g + b, 0.0)


def encoder_reference(x_nchw, p):
    x = jnp.transpose(x_nchw, (0, 2, 3, 1))
    x = _ref_conv(x, p["conv1_w"], p["conv1_b"], 2, 1)
    x = _ref_bn_relu(x, p["bn1_g"], p["bn1_b"])
    x = _ref_conv(x, p["conv2_w"], p["conv2_b"], 2, 1)
    for rb in ("rb1", "rb2"):
        h = _ref_bn_relu(x, p[f"{rb}_bn1_g"], p[f"{rb}_bn1_b"])
        h = _ref_conv(h, p[f"{rb}_conv1_w"], p[f"{rb}_conv1_b"], 1, 1)
        h = _ref_bn_relu(h, p[f"{rb}_bn2_g"], p[f"{rb}_bn2_b"])
        x = _ref_conv(h, p[f"{rb}_conv2_w"], p[f"{rb}_conv2_b"], 1, 0, residual=x)
    return jnp.transpose(x, (0, 3, 1, 2))


# ----------------------------------------------------------------------------
if __name__ == "__main__":
    IN_CH, DIM, B, HW = 4, 32, 2, 16
    key = jax.random.PRNGKey(0)
    kx, kp = jax.random.split(key)
    x = jax.random.normal(kx, (B, IN_CH, HW, HW), jnp.float32)
    params = init_params(kp, IN_CH, DIM)

    fwd = jax.jit(encoder_forward)
    out = jax.block_until_ready(fwd(x, params))

    ref = jax.block_until_ready(jax.jit(encoder_reference)(x, params))
    assert out.shape == (B, DIM, HW // 4, HW // 4), out.shape
    err = float(jnp.max(jnp.abs(out - ref)))
    assert err < 1e-2, f"mismatch vs reference: max abs err {err}"
    print("KERNEL_OK")
</pallas_src>

<mosaic_0001>
module attributes {stable_mosaic.version = 11 : i64} {
  func.func @_conv_gemm_kernel(%arg0: i32, %arg1: memref<64x64xbf16, #tpu.memory_space<vmem>>, %arg2: memref<64x32xbf16, #tpu.memory_space<vmem>>, %arg3: memref<1x32xf32, #tpu.memory_space<vmem>>, %arg4: memref<64x32xf32, #tpu.memory_space<vmem>>, %arg5: memref<1x1x32xf32, #tpu.memory_space<vmem>>, %arg6: memref<1x1x32xf32, #tpu.memory_space<vmem>>) attributes {dimension_semantics = [#tpu.dimension_semantics<parallel>], iteration_bounds = array<i64: 2>, scalar_prefetch = 0 : i64, scratch_operands = 0 : i64, tpu.core_type = #tpu.core_type<tc>, window_params = [{transform_indices = @transform_0, window_bounds = array<i64: 64, 64>}, {pipeline_mode = #tpu.pipeline_mode<synchronous>, transform_indices = @transform_1, window_bounds = array<i64: 64, 32>}, {pipeline_mode = #tpu.pipeline_mode<synchronous>, transform_indices = @transform_2, window_bounds = array<i64: 1, 32>}, {transform_indices = @transform_3, window_bounds = array<i64: 64, 32>}, {transform_indices = @transform_4, window_bounds = array<i64: 1, 1, 32>}, {transform_indices = @transform_5, window_bounds = array<i64: 1, 1, 32>}]} {
    %c0 = arith.constant 0 : index
    %c0_0 = arith.constant 0 : index
    %0 = vector.load %arg1[%c0, %c0_0] : memref<64x64xbf16, #tpu.memory_space<vmem>>, vector<64x64xbf16>
    %c0_1 = arith.constant 0 : index
    %c0_2 = arith.constant 0 : index
    %1 = vector.load %arg2[%c0_1, %c0_2] : memref<64x32xbf16, #tpu.memory_space<vmem>>, vector<64x32xbf16>
    %cst = arith.constant dense<0.000000e+00> : vector<64x32xf32>
    %2 = tpu.matmul %0, %1, %cst {dimension_numbers = #tpu.dot_dimension_numbers<[1], [0], [0], [1], [0, 0, 1, 1], [], []>} : vector<64x64xbf16>, vector<64x32xbf16>, vector<64x32xf32> -> vector<64x32xf32>
    %c0_3 = arith.constant 0 : index
    %c0_4 = arith.constant 0 : index
    %3 = vector.load %arg3[%c0_3, %c0_4] : memref<1x32xf32, #tpu.memory_space<vmem>>, vector<1x32xf32>
    %4 = vector.broadcast %3 : vector<1x32xf32> to vector<64x32xf32>
    %5 = arith.addf %2, %4 : vector<64x32xf32>
    %c0_5 = arith.constant 0 : index
    %c0_6 = arith.constant 0 : index
    %6 = vector.load %arg4[%c0_5, %c0_6] : memref<64x32xf32, #tpu.memory_space<vmem>>, vector<64x32xf32>
    tpu.vector_store %arg4[%c0_5, %c0_6], %5 {strides = array<i32>} : memref<64x32xf32, #tpu.memory_space<vmem>>, vector<64x32xf32>,
    %c64_i32 = arith.constant 64 : i32
    %7 = arith.muli %arg0, %c64_i32 : i32
    %c128_i32 = arith.constant 128 : i32
    %8 = arith.subi %c128_i32, %7 : i32
    %9 = tpu.iota {dimensions = array<i32: 0>} : vector<64x1xi32>
    %10 = vector.broadcast %8 : i32 to vector<64x1xi32>
    %11 = arith.cmpi slt, %9, %10 : vector<64x1xi32>
    %cst_7 = arith.constant 0.000000e+00 : f32
    %12 = vector.shape_cast %11 : vector<64x1xi1> to vector<64x1xi1>
    %13 = vector.broadcast %12 : vector<64x1xi1> to vector<64x32xi1>
    %14 = vector.broadcast %cst_7 : f32 to vector<64x32xf32>
    %15 = arith.select %13, %5, %14 : vector<64x32xi1>, vector<64x32xf32>
    %cst_8 = arith.constant dense<0.000000e+00> : vector<32xf32>
    %16 = vector.multi_reduction <add>, %15, %cst_8 [0] : vector<64x32xf32> to vector<32xf32>
    %17 = vector.shape_cast %16 : vector<32xf32> to vector<1x32xf32>
    %18 = vector.shape_cast %17 : vector<1x32xf32> to vector<1x1x32xf32>
    %c0_9 = arith.constant 0 : index
    %c0_10 = arith.constant 0 : index
    %c0_11 = arith.constant 0 : index
    %19 = vector.load %arg5[%c0_9, %c0_10, %c0_11] : memref<1x1x32xf32, #tpu.memory_space<vmem>>, vector<1x1x32xf32>
    tpu.vector_store %arg5[%c0_9, %c0_10, %c0_11], %18 {strides = array<i32>} : memref<1x1x32xf32, #tpu.memory_space<vmem>>, vector<1x1x32xf32>,
    %20 = arith.mulf %15, %15 : vector<64x32xf32>
    %cst_12 = arith.constant dense<0.000000e+00> : vector<32xf32>
    %21 = vector.multi_reduction <add>, %20, %cst_12 [0] : vector<64x32xf32> to vector<32xf32>
    %22 = vector.shape_cast %21 : vector<32xf32> to vector<1x32xf32>
    %23 = vector.shape_cast %22 : vector<1x32xf32> to vector<1x1x32xf32>
    %c0_13 = arith.constant 0 : index
    %c0_14 = arith.constant 0 : index
    %c0_15 = arith.constant 0 : index
    %24 = vector.load %arg6[%c0_13, %c0_14, %c0_15] : memref<1x1x32xf32, #tpu.memory_space<vmem>>, vector<1x1x32xf32>
    tpu.vector_store %arg6[%c0_13, %c0_14, %c0_15], %23 {strides = array<i32>} : memref<1x1x32xf32, #tpu.memory_space<vmem>>, vector<1x1x32xf32>,
    return
  }
  func.func @transform_0(%arg0: i32) -> (i32, i32) {
    %c0_i32 = arith.constant 0 : i32
    %c0_i32_0 = arith.constant 0 : i32
    return %arg0, %c0_i32 : i32, i32
  }
  func.func @transform_1(%arg0: i32) -> (i32, i32) {
    %c0_i32 = arith.constant 0 : i32
    %c0_i32_0 = arith.constant 0 : i32
    %c0_i32_1 = arith.constant 0 : i32
    return %c0_i32, %c0_i32_0 : i32, i32
  }
  func.func @transform_2(%arg0: i32) -> (i32, i32) {
    %c0_i32 = arith.constant 0 : i32
    %c0_i32_0 = arith.constant 0 : i32
    %c0_i32_1 = arith.constant 0 : i32
    return %c0_i32, %c0_i32_0 : i32, i32
  }
  func.func @transform_3(%arg0: i32) -> (i32, i32) {
    %c0_i32 = arith.constant 0 : i32
    %c0_i32_0 = arith.constant 0 : i32
    return %arg0, %c0_i32 : i32, i32
  }
  func.func @transform_4(%arg0: i32) -> (i32, i32, i32) {
    %c0_i32 = arith.constant 0 : i32
    %c0_i32_0 = arith.constant 0 : i32
    %c0_i32_1 = arith.constant 0 : i32
    return %arg0, %c0_i32, %c0_i32_0 : i32, i32, i32
  }
  func.func @transform_5(%arg0: i32) -> (i32, i32, i32) {
    %c0_i32 = arith.constant 0 : i32
    %c0_i32_0 = arith.constant 0 : i32
    %c0_i32_1 = arith.constant 0 : i32
    return %arg0, %c0_i32, %c0_i32_0 : i32, i32, i32
  }
}

module attributes {stable_mosaic.version = 11 : i64} {
  func.func @_bn_relu_kernel(%arg0: i32, %arg1: memref<16x128xf32, #tpu.memory_space<vmem>>, %arg2: memref<1x128xf32, #tpu.memory_space<vmem>>, %arg3: memref<1x128xf32, #tpu.memory_space<vmem>>, %arg4: memref<16x128xbf16, #tpu.memory_space<vmem>>) attributes {dimension_semantics = [#tpu.dimension_semantics<parallel>], iteration_bounds = array<i64: 2>, scalar_prefetch = 0 : i64, scratch_operands = 0 : i64, tpu.core_type = #tpu.core_type<tc>, window_params = [{transform_indices = @transform_0, window_bounds = array<i64: 16, 128>}, {pipeline_mode = #tpu.pipeline_mode<synchronous>, transform_indices = @transform_1, window_bounds = array<i64: 1, 128>}, {pipeline_mode = #tpu.pipeline_mode<synchronous>, transform_indices = @transform_2, window_bounds = array<i64: 1, 128>}, {transform_indices = @transform_3, window_bounds = array<i64: 16, 128>}]} {
    %c0 = arith.constant 0 : index
    %c0_0 = arith.constant 0 : index
    %0 = vector.load %arg1[%c0, %c0_0] : memref<16x128xf32, #tpu.memory_space<vmem>>, vector<16x128xf32>
    %c0_1 = arith.constant 0 : index
    %c0_2 = arith.constant 0 : index
    %1 = vector.load %arg2[%c0_1, %c0_2] : memref<1x128xf32, #tpu.memory_space<vmem>>, vector<1x128xf32>
    %2 = vector.broadcast %1 : vector<1x128xf32> to vector<16x128xf32>
    %3 = arith.mulf %0, %2 : vector<16x128xf32>
    %c0_3 = arith.constant 0 : index
    %c0_4 = arith.constant 0 : index
    %4 = vector.load %arg3[%c0_3, %c0_4] : memref<1x128xf32, #tpu.memory_space<vmem>>, vector<1x128xf32>
    %5 = vector.broadcast %4 : vector<1x128xf32> to vector<16x128xf32>
    %6 = arith.addf %3, %5 : vector<16x128xf32>
    %cst = arith.constant 0.000000e+00 : f32
    %7 = vector.broadcast %cst : f32 to vector<16x128xf32>
    %8 = arith.maximumf %6, %7 : vector<16x128xf32>
    %9 = arith.truncf %8 : vector<16x128xf32> to vector<16x128xbf16>
    %c0_5 = arith.constant 0 : index
    %c0_6 = arith.constant 0 : index
    %10 = vector.load %arg4[%c0_5, %c0_6] : memref<16x128xbf16, #tpu.memory_space<vmem>>, vector<16x128xbf16>
    tpu.vector_store %arg4[%c0_5, %c0_6], %9 {strides = array<i32>} : memref<16x128xbf16, #tpu.memory_space<vmem>>, vector<16x128xbf16>,
    return
  }
  func.func @transform_0(%arg0: i32) -> (i32, i32) {
    %c0_i32 = arith.constant 0 : i32
    %c0_i32_0 = arith.constant 0 : i32
    return %arg0, %c0_i32 : i32, i32
  }
  func.func @transform_1(%arg0: i32) -> (i32, i32) {
    %c0_i32 = arith.constant 0 : i32
    %c0_i32_0 = arith.constant 0 : i32
    %c0_i32_1 = arith.constant 0 : i32
    return %c0_i32, %c0_i32_0 : i32, i32
  }
  func.func @transform_2(%arg0: i32) -> (i32, i32) {
    %c0_i32 = arith.constant 0 : i32
    %c0_i32_0 = arith.constant 0 : i32
    %c0_i32_1 = arith.constant 0 : i32
    return %c0_i32, %c0_i32_0 : i32, i32
  }
  func.func @transform_3(%arg0: i32) -> (i32, i32) {
    %c0_i32 = arith.constant 0 : i32
    %c0_i32_0 = arith.constant 0 : i32
    return %arg0, %c0_i32 : i32, i32
  }
}

module attributes {stable_mosaic.version = 11 : i64} {
  func.func @_bn_relu_kernel(%arg0: i32, %arg1: memref<8x128xf32, #tpu.memory_space<vmem>>, %arg2: memref<1x128xf32, #tpu.memory_space<vmem>>, %arg3: memref<1x128xf32, #tpu.memory_space<vmem>>, %arg4: memref<8x128xbf16, #tpu.memory_space<vmem>>) attributes {dimension_semantics = [#tpu.dimension_semantics<parallel>], iteration_bounds = array<i64: 1>, scalar_prefetch = 0 : i64, scratch_operands = 0 : i64, tpu.core_type = #tpu.core_type<tc>, window_params = [{transform_indices = @transform_0, window_bounds = array<i64: 8, 128>}, {pipeline_mode = #tpu.pipeline_mode<synchronous>, transform_indices = @transform_1, window_bounds = array<i64: 1, 128>}, {pipeline_mode = #tpu.pipeline_mode<synchronous>, transform_indices = @transform_2, window_bounds = array<i64: 1, 128>}, {transform_indices = @transform_3, window_bounds = array<i64: 8, 128>}]} {
    %c0 = arith.constant 0 : index
    %c0_0 = arith.constant 0 : index
    %0 = vector.load %arg1[%c0, %c0_0] : memref<8x128xf32, #tpu.memory_space<vmem>>, vector<8x128xf32>
    %c0_1 = arith.constant 0 : index
    %c0_2 = arith.constant 0 : index
    %1 = vector.load %arg2[%c0_1, %c0_2] : memref<1x128xf32, #tpu.memory_space<vmem>>, vector<1x128xf32>
    %2 = vector.broadcast %1 : vector<1x128xf32> to vector<8x128xf32>
    %3 = arith.mulf %0, %2 : vector<8x128xf32>
    %c0_3 = arith.constant 0 : index
    %c0_4 = arith.constant 0 : index
    %4 = vector.load %arg3[%c0_3, %c0_4] : memref<1x128xf32, #tpu.memory_space<vmem>>, vector<1x128xf32>
    %5 = vector.broadcast %4 : vector<1x128xf32> to vector<8x128xf32>
    %6 = arith.addf %3, %5 : vector<8x128xf32>
    %cst = arith.constant 0.000000e+00 : f32
    %7 = vector.broadcast %cst : f32 to vector<8x128xf32>
    %8 = arith.maximumf %6, %7 : vector<8x128xf32>
    %9 = arith.truncf %8 : vector<8x128xf32> to vector<8x128xbf16>
    %c0_5 = arith.constant 0 : index
    %c0_6 = arith.constant 0 : index
    %10 = vector.load %arg4[%c0_5, %c0_6] : memref<8x128xbf16, #tpu.memory_space<vmem>>, vector<8x128xbf16>
    tpu.vector_store %arg4[%c0_5, %c0_6], %9 {strides = array<i32>} : memref<8x128xbf16, #tpu.memory_space<vmem>>, vector<8x128xbf16>,
    return
  }
  func.func @transform_0(%arg0: i32) -> (i32, i32) {
    %c0_i32 = arith.constant 0 : i32
    %c0_i32_0 = arith.constant 0 : i32
    return %arg0, %c0_i32 : i32, i32
  }
  func.func @transform_1(%arg0: i32) -> (i32, i32) {
    %c0_i32 = arith.constant 0 : i32
    %c0_i32_0 = arith.constant 0 : i32
    %c0_i32_1 = arith.constant 0 : i32
    return %c0_i32, %c0_i32_0 : i32, i32
  }
  func.func @transform_2(%arg0: i32) -> (i32, i32) {
    %c0_i32 = arith.constant 0 : i32
    %c0_i32_0 = arith.constant 0 : i32
    %c0_i32_1 = arith.constant 0 : i32
    return %c0_i32, %c0_i32_0 : i32, i32
  }
  func.func @transform_3(%arg0: i32) -> (i32, i32) {
    %c0_i32 = arith.constant 0 : i32
    %c0_i32_0 = arith.constant 0 : i32
    return %arg0, %c0_i32 : i32, i32
  }
}

module attributes {stable_mosaic.version = 11 : i64} {
  func.func @_conv_gemm_kernel(%arg0: i32, %arg1: memref<16x512xbf16, #tpu.memory_space<vmem>>, %arg2: memref<512x32xbf16, #tpu.memory_space<vmem>>, %arg3: memref<1x32xf32, #tpu.memory_space<vmem>>, %arg4: memref<16x32xf32, #tpu.memory_space<vmem>>, %arg5: memref<1x1x32xf32, #tpu.memory_space<vmem>>, %arg6: memref<1x1x32xf32, #tpu.memory_space<vmem>>) attributes {dimension_semantics = [#tpu.dimension_semantics<parallel>], iteration_bounds = array<i64: 2>, scalar_prefetch = 0 : i64, scratch_operands = 0 : i64, tpu.core_type = #tpu.core_type<tc>, window_params = [{transform_indices = @transform_0, window_bounds = array<i64: 16, 512>}, {pipeline_mode = #tpu.pipeline_mode<synchronous>, transform_indices = @transform_1, window_bounds = array<i64: 512, 32>}, {pipeline_mode = #tpu.pipeline_mode<synchronous>, transform_indices = @transform_2, window_bounds = array<i64: 1, 32>}, {transform_indices = @transform_3, window_bounds = array<i64: 16, 32>}, {transform_indices = @transform_4, window_bounds = array<i64: 1, 1, 32>}, {transform_indices = @transform_5, window_bounds = array<i64: 1, 1, 32>}]} {
    %c0 = arith.constant 0 : index
    %c0_0 = arith.constant 0 : index
    %0 = vector.load %arg1[%c0, %c0_0] : memref<16x512xbf16, #tpu.memory_space<vmem>>, vector<16x512xbf16>
    %c0_1 = arith.constant 0 : index
    %c0_2 = arith.constant 0 : index
    %1 = vector.load %arg2[%c0_1, %c0_2] : memref<512x32xbf16, #tpu.memory_space<vmem>>, vector<512x32xbf16>
    %cst = arith.constant dense<0.000000e+00> : vector<16x32xf32>
    %2 = tpu.matmul %0, %1, %cst {dimension_numbers = #tpu.dot_dimension_numbers<[1], [0], [0], [1], [0, 0, 1, 1], [], []>} : vector<16x512xbf16>, vector<512x32xbf16>, vector<16x32xf32> -> vector<16x32xf32>
    %c0_3 = arith.constant 0 : index
    %c0_4 = arith.constant 0 : index
    %3 = vector.load %arg3[%c0_3, %c0_4] : memref<1x32xf32, #tpu.memory_space<vmem>>, vector<1x32xf32>
    %4 = vector.broadcast %3 : vector<1x32xf32> to vector<16x32xf32>
    %5 = arith.addf %2, %4 : vector<16x32xf32>
    %c0_5 = arith.constant 0 : index
    %c0_6 = arith.constant 0 : index
    %6 = vector.load %arg4[%c0_5, %c0_6] : memref<16x32xf32, #tpu.memory_space<vmem>>, vector<16x32xf32>
    tpu.vector_store %arg4[%c0_5, %c0_6], %5 {strides = array<i32>} : memref<16x32xf32, #tpu.memory_space<vmem>>, vector<16x32xf32>,
    %c16_i32 = arith.constant 16 : i32
    %7 = arith.muli %arg0, %c16_i32 : i32
    %c32_i32 = arith.constant 32 : i32
    %8 = arith.subi %c32_i32, %7 : i32
    %9 = tpu.iota {dimensions = array<i32: 0>} : vector<16x1xi32>
    %10 = vector.broadcast %8 : i32 to vector<16x1xi32>
    %11 = arith.cmpi slt, %9, %10 : vector<16x1xi32>
    %cst_7 = arith.constant 0.000000e+00 : f32
    %12 = vector.shape_cast %11 : vector<16x1xi1> to vector<16x1xi1>
    %13 = vector.broadcast %12 : vector<16x1xi1> to vector<16x32xi1>
    %14 = vector.broadcast %cst_7 : f32 to vector<16x32xf32>
    %15 = arith.select %13, %5, %14 : vector<16x32xi1>, vector<16x32xf32>
    %cst_8 = arith.constant dense<0.000000e+00> : vector<32xf32>
    %16 = vector.multi_reduction <add>, %15, %cst_8 [0] : vector<16x32xf32> to vector<32xf32>
    %17 = vector.shape_cast %16 : vector<32xf32> to vector<1x32xf32>
    %18 = vector.shape_cast %17 : vector<1x32xf32> to vector<1x1x32xf32>
    %c0_9 = arith.constant 0 : index
    %c0_10 = arith.constant 0 : index
    %c0_11 = arith.constant 0 : index
    %19 = vector.load %arg5[%c0_9, %c0_10, %c0_11] : memref<1x1x32xf32, #tpu.memory_space<vmem>>, vector<1x1x32xf32>
    tpu.vector_store %arg5[%c0_9, %c0_10, %c0_11], %18 {strides = array<i32>} : memref<1x1x32xf32, #tpu.memory_space<vmem>>, vector<1x1x32xf32>,
    %20 = arith.mulf %15, %15 : vector<16x32xf32>
    %cst_12 = arith.constant dense<0.000000e+00> : vector<32xf32>
    %21 = vector.multi_reduction <add>, %20, %cst_12 [0] : vector<16x32xf32> to vector<32xf32>
    %22 = vector.shape_cast %21 : vector<32xf32> to vector<1x32xf32>
    %23 = vector.shape_cast %22 : vector<1x32xf32> to vector<1x1x32xf32>
    %c0_13 = arith.constant 0 : index
    %c0_14 = arith.constant 0 : index
    %c0_15 = arith.constant 0 : index
    %24 = vector.load %arg6[%c0_13, %c0_14, %c0_15] : memref<1x1x32xf32, #tpu.memory_space<vmem>>, vector<1x1x32xf32>
    tpu.vector_store %arg6[%c0_13, %c0_14, %c0_15], %23 {strides = array<i32>} : memref<1x1x32xf32, #tpu.memory_space<vmem>>, vector<1x1x32xf32>,
    return
  }
  func.func @transform_0(%arg0: i32) -> (i32, i32) {
    %c0_i32 = arith.constant 0 : i32
    %c0_i32_0 = arith.constant 0 : i32
    return %arg0, %c0_i32 : i32, i32
  }
  func.func @transform_1(%arg0: i32) -> (i32, i32) {
    %c0_i32 = arith.constant 0 : i32
    %c0_i32_0 = arith.constant 0 : i32
    %c0_i32_1 = arith.constant 0 : i32
    return %c0_i32, %c0_i32_0 : i32, i32
  }
  func.func @transform_2(%arg0: i32) -> (i32, i32) {
    %c0_i32 = arith.constant 0 : i32
    %c0_i32_0 = arith.constant 0 : i32
    %c0_i32_1 = arith.constant 0 : i32
    return %c0_i32, %c0_i32_0 : i32, i32
  }
  func.func @transform_3(%arg0: i32) -> (i32, i32) {
    %c0_i32 = arith.constant 0 : i32
    %c0_i32_0 = arith.constant 0 : i32
    return %arg0, %c0_i32 : i32, i32
  }
  func.func @transform_4(%arg0: i32) -> (i32, i32, i32) {
    %c0_i32 = arith.constant 0 : i32
    %c0_i32_0 = arith.constant 0 : i32
    %c0_i32_1 = arith.constant 0 : i32
    return %arg0, %c0_i32, %c0_i32_0 : i32, i32, i32
  }
  func.func @transform_5(%arg0: i32) -> (i32, i32, i32) {
    %c0_i32 = arith.constant 0 : i32
    %c0_i32_0 = arith.constant 0 : i32
    %c0_i32_1 = arith.constant 0 : i32
    return %arg0, %c0_i32, %c0_i32_0 : i32, i32, i32
  }
}

module attributes {stable_mosaic.version = 11 : i64} {
  func.func @_conv_gemm_kernel(%arg0: i32, %arg1: memref<16x288xbf16, #tpu.memory_space<vmem>>, %arg2: memref<288x32xbf16, #tpu.memory_space<vmem>>, %arg3: memref<1x32xf32, #tpu.memory_space<vmem>>, %arg4: memref<16x32xf32, #tpu.memory_space<vmem>>, %arg5: memref<1x1x32xf32, #tpu.memory_space<vmem>>, %arg6: memref<1x1x32xf32, #tpu.memory_space<vmem>>) attributes {dimension_semantics = [#tpu.dimension_semantics<parallel>], iteration_bounds = array<i64: 2>, scalar_prefetch = 0 : i64, scratch_operands = 0 : i64, tpu.core_type = #tpu.core_type<tc>, window_params = [{transform_indices = @transform_0, window_bounds = array<i64: 16, 288>}, {pipeline_mode = #tpu.pipeline_mode<synchronous>, transform_indices = @transform_1, window_bounds = array<i64: 288, 32>}, {pipeline_mode = #tpu.pipeline_mode<synchronous>, transform_indices = @transform_2, window_bounds = array<i64: 1, 32>}, {transform_indices = @transform_3, window_bounds = array<i64: 16, 32>}, {transform_indices = @transform_4, window_bounds = array<i64: 1, 1, 32>}, {transform_indices = @transform_5, window_bounds = array<i64: 1, 1, 32>}]} {
    %c0 = arith.constant 0 : index
    %c0_0 = arith.constant 0 : index
    %0 = vector.load %arg1[%c0, %c0_0] : memref<16x288xbf16, #tpu.memory_space<vmem>>, vector<16x288xbf16>
    %c0_1 = arith.constant 0 : index
    %c0_2 = arith.constant 0 : index
    %1 = vector.load %arg2[%c0_1, %c0_2] : memref<288x32xbf16, #tpu.memory_space<vmem>>, vector<288x32xbf16>
    %cst = arith.constant dense<0.000000e+00> : vector<16x32xf32>
    %2 = tpu.matmul %0, %1, %cst {dimension_numbers = #tpu.dot_dimension_numbers<[1], [0], [0], [1], [0, 0, 1, 1], [], []>} : vector<16x288xbf16>, vector<288x32xbf16>, vector<16x32xf32> -> vector<16x32xf32>
    %c0_3 = arith.constant 0 : index
    %c0_4 = arith.constant 0 : index
    %3 = vector.load %arg3[%c0_3, %c0_4] : memref<1x32xf32, #tpu.memory_space<vmem>>, vector<1x32xf32>
    %4 = vector.broadcast %3 : vector<1x32xf32> to vector<16x32xf32>
    %5 = arith.addf %2, %4 : vector<16x32xf32>
    %c0_5 = arith.constant 0 : index
    %c0_6 = arith.constant 0 : index
    %6 = vector.load %arg4[%c0_5, %c0_6] : memref<16x32xf32, #tpu.memory_space<vmem>>, vector<16x32xf32>
    tpu.vector_store %arg4[%c0_5, %c0_6], %5 {strides = array<i32>} : memref<16x32xf32, #tpu.memory_space<vmem>>, vector<16x32xf32>,
    %c16_i32 = arith.constant 16 : i32
    %7 = arith.muli %arg0, %c16_i32 : i32
    %c32_i32 = arith.constant 32 : i32
    %8 = arith.subi %c32_i32, %7 : i32
    %9 = tpu.iota {dimensions = array<i32: 0>} : vector<16x1xi32>
    %10 = vector.broadcast %8 : i32 to vector<16x1xi32>
    %11 = arith.cmpi slt, %9, %10 : vector<16x1xi32>
    %cst_7 = arith.constant 0.000000e+00 : f32
    %12 = vector.shape_cast %11 : vector<16x1xi1> to vector<16x1xi1>
    %13 = vector.broadcast %12 : vector<16x1xi1> to vector<16x32xi1>
    %14 = vector.broadcast %cst_7 : f32 to vector<16x32xf32>
    %15 = arith.select %13, %5, %14 : vector<16x32xi1>, vector<16x32xf32>
    %cst_8 = arith.constant dense<0.000000e+00> : vector<32xf32>
    %16 = vector.multi_reduction <add>, %15, %cst_8 [0] : vector<16x32xf32> to vector<32xf32>
    %17 = vector.shape_cast %16 : vector<32xf32> to vector<1x32xf32>
    %18 = vector.shape_cast %17 : vector<1x32xf32> to vector<1x1x32xf32>
    %c0_9 = arith.constant 0 : index
    %c0_10 = arith.constant 0 : index
    %c0_11 = arith.constant 0 : index
    %19 = vector.load %arg5[%c0_9, %c0_10, %c0_11] : memref<1x1x32xf32, #tpu.memory_space<vmem>>, vector<1x1x32xf32>
    tpu.vector_store %arg5[%c0_9, %c0_10, %c0_11], %18 {strides = array<i32>} : memref<1x1x32xf32, #tpu.memory_space<vmem>>, vector<1x1x32xf32>,
    %20 = arith.mulf %15, %15 : vector<16x32xf32>
    %cst_12 = arith.constant dense<0.000000e+00> : vector<32xf32>
    %21 = vector.multi_reduction <add>, %20, %cst_12 [0] : vector<16x32xf32> to vector<32xf32>
    %22 = vector.shape_cast %21 : vector<32xf32> to vector<1x32xf32>
    %23 = vector.shape_cast %22 : vector<1x32xf32> to vector<1x1x32xf32>
    %c0_13 = arith.constant 0 : index
    %c0_14 = arith.constant 0 : index
    %c0_15 = arith.constant 0 : index
    %24 = vector.load %arg6[%c0_13, %c0_14, %c0_15] : memref<1x1x32xf32, #tpu.memory_space<vmem>>, vector<1x1x32xf32>
    tpu.vector_store %arg6[%c0_13, %c0_14, %c0_15], %23 {strides = array<i32>} : memref<1x1x32xf32, #tpu.memory_space<vmem>>, vector<1x1x32xf32>,
    return
  }
  func.func @transform_0(%arg0: i32) -> (i32, i32) {
    %c0_i32 = arith.constant 0 : i32
    %c0_i32_0 = arith.constant 0 : i32
    return %arg0, %c0_i32 : i32, i32
  }
  func.func @transform_1(%arg0: i32) -> (i32, i32) {
    %c0_i32 = arith.constant 0 : i32
    %c0_i32_0 = arith.constant 0 : i32
    %c0_i32_1 = arith.constant 0 : i32
    return %c0_i32, %c0_i32_0 : i32, i32
  }
  func.func @transform_2(%arg0: i32) -> (i32, i32) {
    %c0_i32 = arith.constant 0 : i32
    %c0_i32_0 = arith.constant 0 : i32
    %c0_i32_1 = arith.constant 0 : i32
    return %c0_i32, %c0_i32_0 : i32, i32
  }
  func.func @transform_3(%arg0: i32) -> (i32, i32) {
    %c0_i32 = arith.constant 0 : i32
    %c0_i32_0 = arith.constant 0 : i32
    return %arg0, %c0_i32 : i32, i32
  }
  func.func @transform_4(%arg0: i32) -> (i32, i32, i32) {
    %c0_i32 = arith.constant 0 : i32
    %c0_i32_0 = arith.constant 0 : i32
    %c0_i32_1 = arith.constant 0 : i32
    return %arg0, %c0_i32, %c0_i32_0 : i32, i32, i32
  }
  func.func @transform_5(%arg0: i32) -> (i32, i32, i32) {
    %c0_i32 = arith.constant 0 : i32
    %c0_i32_0 = arith.constant 0 : i32
    %c0_i32_1 = arith.constant 0 : i32
    return %arg0, %c0_i32, %c0_i32_0 : i32, i32, i32
  }
}

module attributes {stable_mosaic.version = 11 : i64} {
  func.func @_conv_gemm_kernel(%arg0: i32, %arg1: memref<16x32xf32, #tpu.memory_space<vmem>>, %arg2: memref<32x32xbf16, #tpu.memory_space<vmem>>, %arg3: memref<1x32xf32, #tpu.memory_space<vmem>>, %arg4: memref<1x32xf32, #tpu.memory_space<vmem>>, %arg5: memref<1x32xf32, #tpu.memory_space<vmem>>, %arg6: memref<16x32xf32, #tpu.memory_space<vmem>>, %arg7: memref<16x32xf32, #tpu.memory_space<vmem>>, %arg8: memref<1x1x32xf32, #tpu.memory_space<vmem>>, %arg9: memref<1x1x32xf32, #tpu.memory_space<vmem>>) attributes {dimension_semantics = [#tpu.dimension_semantics<parallel>], iteration_bounds = array<i64: 2>, scalar_prefetch = 0 : i64, scratch_operands = 0 : i64, tpu.core_type = #tpu.core_type<tc>, window_params = [{transform_indices = @transform_0, window_bounds = array<i64: 16, 32>}, {pipeline_mode = #tpu.pipeline_mode<synchronous>, transform_indices = @transform_1, window_bounds = array<i64: 32, 32>}, {pipeline_mode = #tpu.pipeline_mode<synchronous>, transform_indices = @transform_2, window_bounds = array<i64: 1, 32>}, {pipeline_mode = #tpu.pipeline_mode<synchronous>, transform_indices = @transform_3, window_bounds = array<i64: 1, 32>}, {pipeline_mode = #tpu.pipeline_mode<synchronous>, transform_indices = @transform_4, window_bounds = array<i64: 1, 32>}, {transform_indices = @transform_5, window_bounds = array<i64: 16, 32>}, {transform_indices = @transform_6, window_bounds = array<i64: 16, 32>}, {transform_indices = @transform_7, window_bounds = array<i64: 1, 1, 32>}, {transform_indices = @transform_8, window_bounds = array<i64: 1, 1, 32>}]} {
    %c0 = arith.constant 0 : index
    %c0_0 = arith.constant 0 : index
    %0 = vector.load %arg1[%c0, %c0_0] : memref<16x32xf32, #tpu.memory_space<vmem>>, vector<16x32xf32>
    %c0_1 = arith.constant 0 : index
    %c0_2 = arith.constant 0 : index
    %1 = vector.load %arg4[%c0_1, %c0_2] : memref<1x32xf32, #tpu.memory_space<vmem>>, vector<1x32xf32>
    %2 = vector.broadcast %1 : vector<1x32xf32> to vector<16x32xf32>
    %3 = arith.mulf %0, %2 : vector<16x32xf32>
    %c0_3 = arith.constant 0 : index
    %c0_4 = arith.constant 0 : index
    %4 = vector.load %arg5[%c0_3, %c0_4] : memref<1x32xf32, #tpu.memory_space<vmem>>, vector<1x32xf32>
    %5 = vector.broadcast %4 : vector<1x32xf32> to vector<16x32xf32>
    %6 = arith.addf %3, %5 : vector<16x32xf32>
    %cst = arith.constant 0.000000e+00 : f32
    %7 = vector.broadcast %cst : f32 to vector<16x32xf32>
    %8 = arith.maximumf %6, %7 : vector<16x32xf32>
    %9 = arith.truncf %8 : vector<16x32xf32> to vector<16x32xbf16>
    %c0_5 = arith.constant 0 : index
    %c0_6 = arith.constant 0 : index
    %10 = vector.load %arg2[%c0_5, %c0_6] : memref<32x32xbf16, #tpu.memory_space<vmem>>, vector<32x32xbf16>
    %cst_7 = arith.constant dense<0.000000e+00> : vector<16x32xf32>
    %11 = tpu.matmul %9, %10, %cst_7 {dimension_numbers = #tpu.dot_dimension_numbers<[1], [0], [0], [1], [0, 0, 1, 1], [], []>} : vector<16x32xbf16>, vector<32x32xbf16>, vector<16x32xf32> -> vector<16x32xf32>
    %c0_8 = arith.constant 0 : index
    %c0_9 = arith.constant 0 : index
    %12 = vector.load %arg3[%c0_8, %c0_9] : memref<1x32xf32, #tpu.memory_space<vmem>>, vector<1x32xf32>
    %13 = vector.broadcast %12 : vector<1x32xf32> to vector<16x32xf32>
    %14 = arith.addf %11, %13 : vector<16x32xf32>
    %c0_10 = arith.constant 0 : index
    %c0_11 = arith.constant 0 : index
    %15 = vector.load %arg6[%c0_10, %c0_11] : memref<16x32xf32, #tpu.memory_space<vmem>>, vector<16x32xf32>
    %16 = arith.addf %14, %15 : vector<16x32xf32>
    %c0_12 = arith.constant 0 : index
    %c0_13 = arith.constant 0 : index
    %17 = vector.load %arg7[%c0_12, %c0_13] : memref<16x32xf32, #tpu.memory_space<vmem>>, vector<16x32xf32>
    tpu.vector_store %arg7[%c0_12, %c0_13], %16 {strides = array<i32>} : memref<16x32xf32, #tpu.memory_space<vmem>>, vector<16x32xf32>,
    %c16_i32 = arith.constant 16 : i32
    %18 = arith.muli %arg0, %c16_i32 : i32
    %c32_i32 = arith.constant 32 : i32
    %19 = arith.subi %c32_i32, %18 : i32
    %20 = tpu.iota {dimensions = array<i32: 0>} : vector<16x1xi32>
    %21 = vector.broadcast %19 : i32 to vector<16x1xi32>
    %22 = arith.cmpi slt, %20, %21 : vector<16x1xi32>
    %cst_14 = arith.constant 0.000000e+00 : f32
    %23 = vector.shape_cast %22 : vector<16x1xi1> to vector<16x1xi1>
    %24 = vector.broadcast %23 : vector<16x1xi1> to vector<16x32xi1>
    %25 = vector.broadcast %cst_14 : f32 to vector<16x32xf32>
    %26 = arith.select %24, %16, %25 : vector<16x32xi1>, vector<16x32xf32>
    %cst_15 = arith.constant dense<0.000000e+00> : vector<32xf32>
    %27 = vector.multi_reduction <add>, %26, %cst_15 [0] : vector<16x32xf32> to vector<32xf32>
    %28 = vector.shape_cast %27 : vector<32xf32> to vector<1x32xf32>
    %29 = vector.shape_cast %28 : vector<1x32xf32> to vector<1x1x32xf32>
    %c0_16 = arith.constant 0 : index
    %c0_17 = arith.constant 0 : index
    %c0_18 = arith.constant 0 : index
    %30 = vector.load %arg8[%c0_16, %c0_17, %c0_18] : memref<1x1x32xf32, #tpu.memory_space<vmem>>, vector<1x1x32xf32>
    tpu.vector_store %arg8[%c0_16, %c0_17, %c0_18], %29 {strides = array<i32>} : memref<1x1x32xf32, #tpu.memory_space<vmem>>, vector<1x1x32xf32>,
    %31 = arith.mulf %26, %26 : vector<16x32xf32>
    %cst_19 = arith.constant dense<0.000000e+00> : vector<32xf32>
    %32 = vector.multi_reduction <add>, %31, %cst_19 [0] : vector<16x32xf32> to vector<32xf32>
    %33 = vector.shape_cast %32 : vector<32xf32> to vector<1x32xf32>
    %34 = vector.shape_cast %33 : vector<1x32xf32> to vector<1x1x32xf32>
    %c0_20 = arith.constant 0 : index
    %c0_21 = arith.constant 0 : index
    %c0_22 = arith.constant 0 : index
    %35 = vector.load %arg9[%c0_20, %c0_21, %c0_22] : memref<1x1x32xf32, #tpu.memory_space<vmem>>, vector<1x1x32xf32>
    tpu.vector_store %arg9[%c0_20, %c0_21, %c0_22], %34 {strides = array<i32>} : memref<1x1x32xf32, #tpu.memory_space<vmem>>, vector<1x1x32xf32>,
    return
  }
  func.func @transform_0(%arg0: i32) -> (i32, i32) {
    %c0_i32 = arith.constant 0 : i32
    %c0_i32_0 = arith.constant 0 : i32
    return %arg0, %c0_i32 : i32, i32
  }
  func.func @transform_1(%arg0: i32) -> (i32, i32) {
    %c0_i32 = arith.constant 0 : i32
    %c0_i32_0 = arith.constant 0 : i32
    %c0_i32_1 = arith.constant 0 : i32
    return %c0_i32, %c0_i32_0 : i32, i32
  }
  func.func @transform_2(%arg0: i32) -> (i32, i32) {
    %c0_i32 = arith.constant 0 : i32
    %c0_i32_0 = arith.constant 0 : i32
    %c0_i32_1 = arith.constant 0 : i32
    return %c0_i32, %c0_i32_0 : i32, i32
  }
  func.func @transform_3(%arg0: i32) -> (i32, i32) {
    %c0_i32 = arith.constant 0 : i32
    %c0_i32_0 = arith.constant 0 : i32
    %c0_i32_1 = arith.constant 0 : i32
    return %c0_i32, %c0_i32_0 : i32, i32
  }
  func.func @transform_4(%arg0: i32) -> (i32, i32) {
    %c0_i32 = arith.constant 0 : i32
    %c0_i32_0 = arith.constant 0 : i32
    %c0_i32_1 = arith.constant 0 : i32
    return %c0_i32, %c0_i32_0 : i32, i32
  }
  func.func @transform_5(%arg0: i32) -> (i32, i32) {
    %c0_i32 = arith.constant 0 : i32
    %c0_i32_0 = arith.constant 0 : i32
    return %arg0, %c0_i32 : i32, i32
  }
  func.func @transform_6(%arg0: i32) -> (i32, i32) {
    %c0_i32 = arith.constant 0 : i32
    %c0_i32_0 = arith.constant 0 : i32
    return %arg0, %c0_i32 : i32, i32
  }
  func.func @transform_7(%arg0: i32) -> (i32, i32, i32) {
    %c0_i32 = arith.constant 0 : i32
    %c0_i32_0 = arith.constant 0 : i32
    %c0_i32_1 = arith.constant 0 : i32
    return %arg0, %c0_i32, %c0_i32_0 : i32, i32, i32
  }
  func.func @transform_8(%arg0: i32) -> (i32, i32, i32) {
    %c0_i32 = arith.constant 0 : i32
    %c0_i32_0 = arith.constant 0 : i32
    %c0_i32_1 = arith.constant 0 : i32
    return %arg0, %c0_i32, %c0_i32_0 : i32, i32, i32
  }
}

module attributes {stable_mosaic.version = 11 : i64} {
  func.func @_conv_gemm_kernel(%arg0: i32, %arg1: memref<16x32xf32, #tpu.memory_space<vmem>>, %arg2: memref<32x32xbf16, #tpu.memory_space<vmem>>, %arg3: memref<1x32xf32, #tpu.memory_space<vmem>>, %arg4: memref<1x32xf32, #tpu.memory_space<vmem>>, %arg5: memref<1x32xf32, #tpu.memory_space<vmem>>, %arg6: memref<16x32xf32, #tpu.memory_space<vmem>>, %arg7: memref<16x32xf32, #tpu.memory_space<vmem>>) attributes {dimension_semantics = [#tpu.dimension_semantics<parallel>], iteration_bounds = array<i64: 2>, scalar_prefetch = 0 : i64, scratch_operands = 0 : i64, tpu.core_type = #tpu.core_type<tc>, window_params = [{transform_indices = @transform_0, window_bounds = array<i64: 16, 32>}, {pipeline_mode = #tpu.pipeline_mode<synchronous>, transform_indices = @transform_1, window_bounds = array<i64: 32, 32>}, {pipeline_mode = #tpu.pipeline_mode<synchronous>, transform_indices = @transform_2, window_bounds = array<i64: 1, 32>}, {pipeline_mode = #tpu.pipeline_mode<synchronous>, transform_indices = @transform_3, window_bounds = array<i64: 1, 32>}, {pipeline_mode = #tpu.pipeline_mode<synchronous>, transform_indices = @transform_4, window_bounds = array<i64: 1, 32>}, {transform_indices = @transform_5, window_bounds = array<i64: 16, 32>}, {transform_indices = @transform_6, window_bounds = array<i64: 16, 32>}]} {
    %c0 = arith.constant 0 : index
    %c0_0 = arith.constant 0 : index
    %0 = vector.load %arg1[%c0, %c0_0] : memref<16x32xf32, #tpu.memory_space<vmem>>, vector<16x32xf32>
    %c0_1 = arith.constant 0 : index
    %c0_2 = arith.constant 0 : index
    %1 = vector.load %arg4[%c0_1, %c0_2] : memref<1x32xf32, #tpu.memory_space<vmem>>, vector<1x32xf32>
    %2 = vector.broadcast %1 : vector<1x32xf32> to vector<16x32xf32>
    %3 = arith.mulf %0, %2 : vector<16x32xf32>
    %c0_3 = arith.constant 0 : index
    %c0_4 = arith.constant 0 : index
    %4 = vector.load %arg5[%c0_3, %c0_4] : memref<1x32xf32, #tpu.memory_space<vmem>>, vector<1x32xf32>
    %5 = vector.broadcast %4 : vector<1x32xf32> to vector<16x32xf32>
    %6 = arith.addf %3, %5 : vector<16x32xf32>
    %cst = arith.constant 0.000000e+00 : f32
    %7 = vector.broadcast %cst : f32 to vector<16x32xf32>
    %8 = arith.maximumf %6, %7 : vector<16x32xf32>
    %9 = arith.truncf %8 : vector<16x32xf32> to vector<16x32xbf16>
    %c0_5 = arith.constant 0 : index
    %c0_6 = arith.constant 0 : index
    %10 = vector.load %arg2[%c0_5, %c0_6] : memref<32x32xbf16, #tpu.memory_space<vmem>>, vector<32x32xbf16>
    %cst_7 = arith.constant dense<0.000000e+00> : vector<16x32xf32>
    %11 = tpu.matmul %9, %10, %cst_7 {dimension_numbers = #tpu.dot_dimension_numbers<[1], [0], [0], [1], [0, 0, 1, 1], [], []>} : vector<16x32xbf16>, vector<32x32xbf16>, vector<16x32xf32> -> vector<16x32xf32>
    %c0_8 = arith.constant 0 : index
    %c0_9 = arith.constant 0 : index
    %12 = vector.load %arg3[%c0_8, %c0_9] : memref<1x32xf32, #tpu.memory_space<vmem>>, vector<1x32xf32>
    %13 = vector.broadcast %12 : vector<1x32xf32> to vector<16x32xf32>
    %14 = arith.addf %11, %13 : vector<16x32xf32>
    %c0_10 = arith.constant 0 : index
    %c0_11 = arith.constant 0 : index
    %15 = vector.load %arg6[%c0_10, %c0_11] : memref<16x32xf32, #tpu.memory_space<vmem>>, vector<16x32xf32>
    %16 = arith.addf %14, %15 : vector<16x32xf32>
    %c0_12 = arith.constant 0 : index
    %c0_13 = arith.constant 0 : index
    %17 = vector.load %arg7[%c0_12, %c0_13] : memref<16x32xf32, #tpu.memory_space<vmem>>, vector<16x32xf32>
    tpu.vector_store %arg7[%c0_12, %c0_13], %16 {strides = array<i32>} : memref<16x32xf32, #tpu.memory_space<vmem>>, vector<16x32xf32>,
    return
  }
  func.func @transform_0(%arg0: i32) -> (i32, i32) {
    %c0_i32 = arith.constant 0 : i32
    %c0_i32_0 = arith.constant 0 : i32
    return %arg0, %c0_i32 : i32, i32
  }
  func.func @transform_1(%arg0: i32) -> (i32, i32) {
    %c0_i32 = arith.constant 0 : i32
    %c0_i32_0 = arith.constant 0 : i32
    %c0_i32_1 = arith.constant 0 : i32
    return %c0_i32, %c0_i32_0 : i32, i32
  }
  func.func @transform_2(%arg0: i32) -> (i32, i32) {
    %c0_i32 = arith.constant 0 : i32
    %c0_i32_0 = arith.constant 0 : i32
    %c0_i32_1 = arith.constant 0 : i32
    return %c0_i32, %c0_i32_0 : i32, i32
  }
  func.func @transform_3(%arg0: i32) -> (i32, i32) {
    %c0_i32 = arith.constant 0 : i32
    %c0_i32_0 = arith.constant 0 : i32
    %c0_i32_1 = arith.constant 0 : i32
    return %c0_i32, %c0_i32_0 : i32, i32
  }
  func.func @transform_4(%arg0: i32) -> (i32, i32) {
    %c0_i32 = arith.constant 0 : i32
    %c0_i32_0 = arith.constant 0 : i32
    %c0_i32_1 = arith.constant 0 : i32
    return %c0_i32, %c0_i32_0 : i32, i32
  }
  func.func @transform_5(%arg0: i32) -> (i32, i32) {
    %c0_i32 = arith.constant 0 : i32
    %c0_i32_0 = arith.constant 0 : i32
    return %arg0, %c0_i32 : i32, i32
  }
  func.func @transform_6(%arg0: i32) -> (i32, i32) {
    %c0_i32 = arith.constant 0 : i32
    %c0_i32_0 = arith.constant 0 : i32
    return %arg0, %c0_i32 : i32, i32
  }
}

</mosaic_0001>

<bundles_post_ra>
// kernel: tile.33
= control target key start
LH: loop header
LB: loop body
LE: loop exit
PB: predicated region body
PF: predicated region fallthrough
CT: control target
= control target key end

     0   :  { %s22_s0 = inlined_call_operand.vmem [shape: f32[32], index: 0, kind: input, shape index: {}]   ;;  %s23_s1 = inlined_call_operand.vmem [shape: f32[4,32], index: 1, kind: output, shape index: {}]  }
   0x1   :  { %v4_v0 = vld [vmem:[%s22_s0] ss:$0 sm:$0xff] }
   0x2   :  { %5 = vst [vmem:[%s23_s1] sm:$0xf] %v4_v0 }

// kernel: tile.34
= control target key start
LH: loop header
LB: loop body
LE: loop exit
PB: predicated region body
PF: predicated region fallthrough
CT: control target
= control target key end

     0   :  { %s37_s8 = smov 32   ;;  %s38_s9 = smov 64   ;;  %vm7_vm0 = vcmask 261120   ;;  %vm13_vm1 = vcmask 1048320   ;;  %vm19_vm2 = vcmask 785920   ;;  %vm25_vm3 = vcmask 523520   ;;  %s55_s0 = inlined_call_operand.vmem [shape: f32[4,32], index: 0, kind: input, shape index: {}]   ;;  %s56_s1 = inlined_call_operand.vmem [shape: f32[1,128], index: 1, kind: output, shape index: {}]  }
   0x1   :  { %v4_v0 = vld [vmem:[%s55_s0] sm:$0xf]  ;;  %s36_s0 = smov 96  }
   0x2   :  { %5 = vst [vmem:[#allocation1] sm:$0xf] %v4_v0 }
   0x9   :  { %v10_v1 = vld [vmem:[#allocation1 + $0x3] sm:$0x1]   ;;  %v22_v2 = vld [vmem:[#allocation1 + $0x1] sm:$0x1]   ;;  %v16_v3 = vld [vmem:[#allocation1 + $0x2] sm:$0x1]  }
   0xa   :  { %11 = vrot.lane.b32.xlu0 %v10_v1, %s36_s0  ;;  %23 = vrot.lane.b32.xlu1 %v22_v2, %s37_s8  ;;  %v6_v4 = vld [vmem:[#allocation1] sm:$0x1]  }
   0xb   :  { %8 = vst.msk [vmem:[#allocation0] sm:$0x1] %vm7_vm0, %v6_v4  }
  0x12   :  { %17 = vrot.lane.b32.xlu0 %v16_v3, %s38_s9 }
  0x7c   :  { %v12_v5 = vpop.permute.xlu0 %11   ;;  %v24_v6 = vpop.permute.xlu1 %23  }
  0x7d   :  { %14 = vst.msk [vmem:[#allocation0] sm:$0x1] %vm13_vm1, %v12_v5  }
  0x84   :  { %v18_v7 = vpop.permute.xlu0 %17  }
  0x85   :  { %20 = vst.msk [vmem:[#allocation0] sm:$0x1] %vm19_vm2, %v18_v7  }
  0x86   :  { %26 = vst.msk [vmem:[#allocation0] sm:$0x1] %vm25_vm3, %v24_v6  }
  0x8d   :  { %v29_v8 = vld [vmem:[#allocation0] sm:$0x1] }
  0x8e   :  { %32 = vst [vmem:[%s56_s1] sm:$0x1] %v29_v8 }

// kernel: encoder_forward.9
= control target key start
LH: loop header
LB: loop body
LE: loop exit
PB: predicated region body
PF: predicated region fallthrough
CT: control target
= control target key end

     0   :  { %s679_s18 = smov 0   ;;  %s787_s0 = inlined_call_operand.vmem [shape: bf16[128,64], index: 0, kind: input, shape index: {}]   ;;  %s788_s1 = inlined_call_operand.vmem [shape: bf16[64,32], index: 1, kind: input, shape index: {}]   ;;  %s789_s2 = inlined_call_operand.vmem [shape: f32[1,32], index: 2, kind: input, shape index: {}]   ;;  %s790_s3 = inlined_call_operand.vmem [shape: f32[128,32], index: 3, kind: output, shape index: {0}]   ;;  %s791_s4 = inlined_call_operand.vmem [shape: f32[2,1,32], index: 4, kind: output, shape index: {1}]   ;;  %s792_s5 = inlined_call_operand.vmem [shape: f32[2,1,32], index: 5, kind: output, shape index: {2}]  }
   0x1 LB: > { %s685_s19 = sadd.s32 4294967295, %s647_s18   ;;  %p568_p0 = scmp.ge.s32.totalorder %s647_s18, 1  ;;  %s647_s18 = sphi %s679_s18, %s16_s18  }
   0x2   : > { %p193_p1 = scmp.lt.s32.totalorder %s647_s18, 3 }
   0x4   : > { %p194_p2 = pnand %p568_p0, %p193_p1 }
   0x5   : > { %s569_s22 = sshll.u32 (!%p194_p2), %s685_s19, 3  ;;  %s609_s8 = sshll.u32 (!%p194_p2), %s685_s19, 6 }
   0x6   : > { %197 = sbr.rel (%p194_p2) target bundleno = 194 (0xc2), region = 32  ;;  %p228_p3 = scmp.lt.s32.totalorder (!%p194_p2), %s569_s22, 15 }
   0x7   : > { %s362_s12 = ssub.s32 (!%p194_p2), 128, %s609_s8  ;;  %p239_p4 = scmp.lt.s32.totalorder (!%p194_p2), %s685_s19, 1 }
   0xb   : > { %v619_v0 = vld [vmem:[%s788_s1 + $0x18] sm:$0xff]  ;;  %v618_v1 = vld [vmem:[%s788_s1 + $0x10] sm:$0xff]  ;;  %s794_s22 = smov (!%p228_p3, %s569_s22), 15  ;;  %v617_v2 = vld [vmem:[%s788_s1 + $0x8] sm:$0xff]  ;;  %vm310_vm0 = vcmask 523264   ;;  %v363_v9 = vlaneseq  ;;  %vm352_vm1 = vcmask 261120   ;;  %v722_v15 = vstv %s362_s12 }
   0xc   : > { %327 = vmatpush.bf16.msra.mxu0 %v619_v0  ;;  %620 = vmatpush.bf16.msra.mxu1 %v619_v0  ;;  %s570_s27 = sshll.u32 %s794_s22, 2  ;;  %v616_v3 = vld [vmem:[%s788_s1] sm:$0xff]  ;;  %s572_s9 = sshll.u32 %s794_s22, 3  ;;  %vm426_vm10 = vcmask 253952  }
   0xd   : > { %621 = vmatpush.bf16.msra.mxu2 %v619_v0  ;;  %622 = vmatpush.bf16.msra.mxu3 %v619_v0  ;;  %s231_s7 = scalar_lea.vmem %s787_s0, %s570_s27  ;;  %v713_v8 = vld [vmem:[%s789_s2] ss:$0 sm:$0xff]  ;;  %s718_s15 = scalar_lea.vmem %s790_s3, %s572_s9  ;;  %v364_v13 = vshrl.u32 %v363_v9, 7 }
   0xe   : > { %v612_v4 = vld [vmem:[%s231_s7] sm:$0xff]  ;;  %v613_v5 = vld [vmem:[%s231_s7 + $0x8] sm:$0xff]  ;;  %v614_v6 = vld [vmem:[%s231_s7 + $0x10] sm:$0xff]  ;;  %s796_s19 = smov (!%p239_p4, %s685_s19), 1 }
   0xf   : > { %v615_v7 = vld [vmem:[%s231_s7 + $0x18] sm:$0xff]  ;;  %v366_v16 = vadd.s32 16, %v364_v13  ;;  %vm373_vm2 = vcmp.lt.s32.totalorder %v364_v13, %v722_v15  ;;  %v365_v17 = vadd.s32 8, %v364_v13  ;;  %v367_v18 = vadd.s32 24, %v364_v13  ;;  %s241_s20 = scalar_lea.vmem %s791_s4, %s796_s19  ;;  %s244_s23 = scalar_lea.vmem %s792_s5, %s796_s19 }
  0x10   : > { %328 = vmatpush.bf16.msra.mxu0 %v618_v1  ;;  %623 = vmatpush.bf16.msra.mxu1 %v618_v1  ;;  %v368_v20 = vadd.s32 32, %v364_v13  ;;  %v370_v30 = vadd.s32 48, %v364_v13  ;;  %v369_v31 = vadd.s32 40, %v364_v13  ;;  %v371_v35 = vadd.s32 56, %v364_v13 }
  0x11   : > { %624 = vmatpush.bf16.msra.mxu2 %v618_v1  ;;  %625 = vmatpush.bf16.msra.mxu3 %v618_v1  ;;  %vm375_vm3 = vcmp.lt.s32.totalorder %v366_v16, %v722_v15  ;;  %vm374_vm4 = vcmp.lt.s32.totalorder %v365_v17, %v722_v15  ;;  %vm376_vm5 = vcmp.lt.s32.totalorder %v367_v18, %v722_v15 }
  0x12   : > { %vm377_vm6 = vcmp.lt.s32.totalorder %v368_v20, %v722_v15  ;;  %vm379_vm7 = vcmp.lt.s32.totalorder %v370_v30, %v722_v15  ;;  %vm378_vm8 = vcmp.lt.s32.totalorder %v369_v31, %v722_v15  ;;  %vm380_vm9 = vcmp.lt.s32.totalorder %v371_v35, %v722_v15 }
  0x14   : > { %329 = vmatpush.bf16.msra.mxu0 %v617_v2  ;;  %626 = vmatpush.bf16.msra.mxu1 %v617_v2 }
  0x15   : > { %627 = vmatpush.bf16.msra.mxu2 %v617_v2  ;;  %628 = vmatpush.bf16.msra.mxu3 %v617_v2 }
  0x18   : > { %330 = vmatpush.bf16.msra.mxu0 %v616_v3  ;;  %629 = vmatpush.bf16.msra.mxu1 %v616_v3 }
  0x19   : > { %630 = vmatpush.bf16.msra.mxu2 %v616_v3  ;;  %631 = vmatpush.bf16.msra.mxu3 %v616_v3 }
  0x1b   : > { %605 = vmatmul.msk.bf16.vlgmr.msra.gmra.mxu0 %vm310_vm0, %v612_v4  ;;  %606 = vmatmul.msk.bf16.vlgmr.msra.gmra.mxu1 %vm310_vm0, %v613_v5 }
  0x1c   : > { %607 = vmatmul.msk.bf16.vlgmr.msra.gmra.mxu2 %vm310_vm0, %v614_v6  ;;  %608 = vmatmul.msk.bf16.vlgmr.msra.gmra.mxu3 %vm310_vm0, %v615_v7 }
  0x98   : > { %v332_v10 = vpop.f32.mrf.mxu0  ;;  %v337_v11 = vpop.f32.mrf.mxu1 }
  0x99   : > { %v333_v12 = vadd.f32 %v713_v8, %v332_v10  ;;  %v338_v14 = vadd.f32 %v713_v8, %v337_v11 }
  0x9b   : > { %353 = vst.msk [vmem:[%s718_s15] sm:$0xff] %vm352_vm1, %v333_v12  ;;  %v397_v22 = vsel %vm373_vm2, %v333_v12, 0.0  ;;  %v399_v29 = vsel %vm375_vm3, %v338_v14, 0.0 }
  0x9c   : > { %355 = vst.msk [vmem:[%s718_s15 + $0x10] sm:$0xff] %vm352_vm1, %v338_v14  ;;  %v428_v32 = vmul.f32 %v397_v22, %v397_v22  ;;  %v405_v36 = vsel %vm352_vm1, %v397_v22, 0.0  ;;  %v430_v37 = vmul.f32 %v399_v29, %v399_v29  ;;  %v408_v43 = vsel %vm352_vm1, %v399_v29, 0.0 }
  0x9e   : > { %v436_v42 = vsel %vm352_vm1, %v428_v32, 0.0  ;;  %v439_v51 = vsel %vm352_vm1, %v430_v37, 0.0 }
  0x9f   : > { %v342_v19 = vpop.f32.mrf.mxu2  ;;  %v347_v21 = vpop.f32.mrf.mxu3 }
  0xa0   : > { %v343_v23 = vadd.f32 %v713_v8, %v342_v19  ;;  %v348_v24 = vadd.f32 %v713_v8, %v347_v21  ;;  %v334_v25 = vpop.f32.mrf.mxu0  ;;  %v339_v26 = vpop.f32.mrf.mxu1 }
  0xa1   : > { %v335_v27 = vadd.f32 %v713_v8, %v334_v25  ;;  %v340_v28 = vadd.f32 %v713_v8, %v339_v26 }
  0xa2   : > { %357 = vst.msk [vmem:[%s718_s15 + $0x20] sm:$0xff] %vm352_vm1, %v343_v23  ;;  %v401_v40 = vsel %vm377_vm6, %v343_v23, 0.0  ;;  %v403_v55 = vsel %vm379_vm7, %v348_v24, 0.0 }
  0xa3   : > { %359 = vst.msk [vmem:[%s718_s15 + $0x30] sm:$0xff] %vm352_vm1, %v348_v24  ;;  %v398_v33 = vsel %vm374_vm4, %v335_v27, 0.0  ;;  %v400_v34 = vsel %vm376_vm5, %v340_v28, 0.0  ;;  %v432_v52 = vmul.f32 %v401_v40, %v401_v40  ;;  %v412_v59 = vsel %vm352_vm1, %v401_v40, 0.0 }
  0xa4   : > { %354 = vst.msk [vmem:[%s718_s15 + $0x8] sm:$0xff] %vm352_vm1, %v335_v27  ;;  %v406_v38 = vsel %vm352_vm1, %v398_v33, 0.0  ;;  %v429_v39 = vmul.f32 %v398_v33, %v398_v33  ;;  %v431_v45 = vmul.f32 %v400_v34, %v400_v34  ;;  %v410_v53 = vsel %vm352_vm1, %v400_v34, 0.0 }
  0xa5   : > { %356 = vst.msk [vmem:[%s718_s15 + $0x18] sm:$0xff] %vm352_vm1, %v340_v28  ;;  %v407_v41 = vadd.f32 %v406_v38, %v405_v36  ;;  %v443_v1 = vsel %vm352_vm1, %v432_v52, 0.0  ;;  %v434_v2 = vmul.f32 %v403_v55, %v403_v55  ;;  %v416_v6 = vsel %vm352_vm1, %v403_v55, 0.0 }
  0xa6   : > { %v437_v44 = vsel %vm352_vm1, %v429_v39, 0.0  ;;  %v441_v60 = vsel %vm352_vm1, %v431_v45, 0.0 }
  0xa7   : > { %v344_v46 = vpop.f32.mrf.mxu2  ;;  %v349_v47 = vpop.f32.mrf.mxu3  ;;  %v438_v48 = vadd.f32 %v437_v44, %v436_v42  ;;  %v409_v49 = vadd.f32 %v408_v43, %v407_v41  ;;  %v447_v11 = vsel %vm352_vm1, %v434_v2, 0.0 }
  0xa8   : > { %v345_v50 = vadd.f32 %v713_v8, %v344_v46  ;;  %v350_v54 = vadd.f32 %v713_v8, %v349_v47 }
  0xa9   : > { %v411_v56 = vadd.f32 %v410_v53, %v409_v49  ;;  %v440_v57 = vadd.f32 %v439_v51, %v438_v48 }
  0xaa   : > { %358 = vst.msk [vmem:[%s718_s15 + $0x28] sm:$0xff] %vm352_vm1, %v345_v50  ;;  %v402_v58 = vsel %vm378_vm8, %v345_v50, 0.0  ;;  %v404_v0 = vsel %vm380_vm9, %v350_v54, 0.0 }
  0xab   : > { %v433_v61 = vmul.f32 %v402_v58, %v402_v58  ;;  %360 = vst.msk [vmem:[%s718_s15 + $0x38] sm:$0xff] %vm352_vm1, %v350_v54  ;;  %v442_v62 = vadd.f32 %v441_v60, %v440_v57  ;;  %v413_v63 = vadd.f32 %v412_v59, %v411_v56  ;;  %v414_v3 = vsel %vm352_vm1, %v402_v58, 0.0 }
  0xac   : > { %v435_v8 = vmul.f32 %v404_v0, %v404_v0  ;;  %v418_v12 = vsel %vm352_vm1, %v404_v0, 0.0 }
  0xad   : > { %v415_v4 = vadd.f32 %v414_v3, %v413_v63  ;;  %v444_v5 = vadd.f32 %v443_v1, %v442_v62  ;;  %v445_v7 = vsel %vm352_vm1, %v433_v61, 0.0 }
  0xae   : > { %v449_v15 = vsel %vm352_vm1, %v435_v8, 0.0 }
  0xaf   : > { %v446_v9 = vadd.f32 %v445_v7, %v444_v5  ;;  %v417_v10 = vadd.f32 %v416_v6, %v415_v4 }
  0xb1   : > { %v419_v13 = vadd.f32 %v418_v12, %v417_v10  ;;  %v448_v14 = vadd.f32 %v447_v11, %v446_v9 }
  0xb3   : > { %v420_v16 = vrot.slane %v419_v13, 4  ;;  %v450_v17 = vadd.f32 %v449_v15, %v448_v14 }
  0xb5   : > { %v421_v18 = vadd.f32 %v420_v16, %v419_v13  ;;  %v451_v19 = vrot.slane %v450_v17, 4 }
  0xb7   : > { %v422_v20 = vrot.slane %v421_v18, 2  ;;  %v452_v21 = vadd.f32 %v451_v19, %v450_v17 }
  0xb9   : > { %v423_v22 = vadd.f32 %v422_v20, %v421_v18  ;;  %v453_v23 = vrot.slane %v452_v21, 2 }
  0xbb   : > { %v424_v24 = vrot.slane %v423_v22, 1  ;;  %v454_v25 = vadd.f32 %v453_v23, %v452_v21 }
  0xbd   : > { %v425_v26 = vadd.f32 %v424_v24, %v423_v22  ;;  %v455_v27 = vrot.slane %v454_v25, 1 }
  0xbf   : > { %427 = vst.msk [vmem:[%s241_s20] sm:$0x1] %vm426_vm10, %v425_v26  ;;  %v456_v28 = vadd.f32 %v455_v27, %v454_v25 }
  0xc1   : > { %457 = vst.msk [vmem:[%s244_s23] sm:$0x1] %vm426_vm10, %v456_v28 }
  0xc2 PF: > { %s16_s18 = sadd.s32 1, %s647_s18  }
  0xc3   : > { %p13_p5 = scmp.ge.s32.totalorder %s16_s18, 4  }
  0xc5   :  { %15 = sbr.rel (!%p13_p5) target bundleno = 1 (0x1), region = 86 }

// kernel: encoder_forward.10
= control target key start
LH: loop header
LB: loop body
LE: loop exit
PB: predicated region body
PF: predicated region fallthrough
CT: control target
= control target key end

     0   :  { %s304_s12 = smov 0   ;;  %s321_s0 = inlined_call_operand.vmem [shape: f32[32,128], index: 0, kind: input, shape index: {}]   ;;  %s322_s1 = inlined_call_operand.vmem [shape: f32[1,128], index: 1, kind: input, shape index: {}]   ;;  %s323_s2 = inlined_call_operand.vmem [shape: f32[1,128], index: 2, kind: input, shape index: {}]   ;;  %s324_s3 = inlined_call_operand.vmem [shape: bf16[32,128], index: 3, kind: output, shape index: {}]  }
   0x1 LB: > { %s250_s13 = sadd.s32 4294967295, %s282_s12   ;;  %p254_p0 = scmp.ge.s32.totalorder %s282_s12, 1  ;;  %s282_s12 = sphi %s304_s12, %s13_s12  }
   0x2   : > { %p138_p1 = scmp.lt.s32.totalorder %s282_s12, 3 }
   0x4   : > { %p139_p2 = pnand %p254_p0, %p138_p1 }
   0x5   : > { %s255_s14 = sshll.u32 (!%p139_p2), %s250_s13, 1 }
   0x6   : > { %142 = sbr.rel (%p139_p2) target bundleno = 24 (0x18), region = 32  ;;  %p163_p3 = scmp.lt.s32.totalorder (!%p139_p2), %s255_s14, 3 }
   0xb   : > { %s326_s14 = smov (!%p163_p3, %s255_s14), 3  ;;  %v274_v0 = vld [vmem:[%s322_s1] ss:$0 sm:$0xff] }
   0xc   : > { %s256_s17 = sshll.u32 %s326_s14, 3  ;;  %v275_v1 = vld [vmem:[%s323_s2] ss:$0 sm:$0xff]  ;;  %s258_s23 = sshll.u32 %s326_s14, 2 }
   0xd   : > { %s166_s20 = scalar_lea.vmem %s321_s0, %s256_s17  ;;  %s172_s26 = scalar_lea.vmem %s324_s3, %s258_s23 }
   0xe   : > { %v174_v2 = vld [vmem:[%s166_s20] sm:$0xff]  ;;  %v175_v3 = vld [vmem:[%s166_s20 + $0x8] sm:$0xff] }
   0xf   : > { %v180_v4 = vmul.f32 %v274_v0, %v174_v2  ;;  %v181_v5 = vmul.f32 %v274_v0, %v175_v3 }
  0x11   : > { %v186_v6 = vadd.f32 %v275_v1, %v180_v4  ;;  %v187_v7 = vadd.f32 %v275_v1, %v181_v5 }
  0x13   : > { %v188_v8 = vmax.f32 %v186_v6, 0.0  ;;  %v189_v9 = vmax.f32 %v187_v7, 0.0 }
  0x15   : > { %v264_v10 = vpack.c.bf16 %v189_v9, %v188_v8 }
  0x17   : > { %265 = vst [vmem:[%s172_s26] sm:$0xff] %v264_v10  }
  0x18 PF: > { %s13_s12 = sadd.s32 1, %s282_s12  }
  0x19   : > { %p10_p4 = scmp.ge.s32.totalorder %s13_s12, 4  }
  0x1b   :  { %12 = sbr.rel (!%p10_p4) target bundleno = 1 (0x1), region = 62 }

// kernel: encoder_forward.12
= control target key start
LH: loop header
LB: loop body
LE: loop exit
PB: predicated region body
PF: predicated region fallthrough
CT: control target
= control target key end

     0   :  { %s66_s0 = inlined_call_operand.vmem [shape: f32[8,128], index: 0, kind: input, shape index: {}]   ;;  %s67_s1 = inlined_call_operand.vmem [shape: f32[1,128], index: 1, kind: input, shape index: {}]   ;;  %s68_s2 = inlined_call_operand.vmem [shape: f32[1,128], index: 2, kind: input, shape index: {}]   ;;  %s69_s3 = inlined_call_operand.vmem [shape: bf16[8,128], index: 3, kind: output, shape index: {}]  }
   0x1   :  { %v14_v0 = vld [vmem:[%s66_s0] sm:$0xff] }
   0x2   :  { %v32_v1 = vld [vmem:[%s67_s1] ss:$0 sm:$0xff] }
   0x3   :  { %v33_v2 = vld [vmem:[%s68_s2] ss:$0 sm:$0xff]  ;;  %v19_v3 = vmul.f32 %v32_v1, %v14_v0 }
   0x5   :  { %v24_v4 = vadd.f32 %v33_v2, %v19_v3 }
   0x7   :  { %v25_v5 = vmax.f32 %v24_v4, 0.0 }
   0x9   :  { %v26_v6 = vpack.c.bf16 %v25_v5, %v25_v5 }
   0xb   :  { %27 = vst [vmem:[%s69_s3] sm:$0xf] %v26_v6 }

// kernel: encoder_forward.11
= control target key start
LH: loop header
LB: loop body
LE: loop exit
PB: predicated region body
PF: predicated region fallthrough
CT: control target
= control target key end

     0   :  { %s975_s18 = smov 0   ;;  %s1113_s0 = inlined_call_operand.vmem [shape: bf16[32,512], index: 0, kind: input, shape index: {}]   ;;  %s1114_s1 = inlined_call_operand.vmem [shape: bf16[512,32], index: 1, kind: input, shape index: {}]   ;;  %s1115_s2 = inlined_call_operand.vmem [shape: f32[1,32], index: 2, kind: input, shape index: {}]   ;;  %s1116_s3 = inlined_call_operand.vmem [shape: f32[32,32], index: 3, kind: output, shape index: {0}]   ;;  %s1117_s4 = inlined_call_operand.vmem [shape: f32[2,1,32], index: 4, kind: output, shape index: {1}]   ;;  %s1118_s5 = inlined_call_operand.vmem [shape: f32[2,1,32], index: 5, kind: output, shape index: {2}]  }
   0x1 LB: > { %s981_s19 = sadd.s32 4294967295, %s943_s18   ;;  %p738_p0 = scmp.ge.s32.totalorder %s943_s18, 1  ;;  %s943_s18 = sphi %s975_s18, %s16_s18  }
   0x2   : > { %p194_p1 = scmp.lt.s32.totalorder %s943_s18, 3 }
   0x4   : > { %p195_p2 = pnand %p738_p0, %p194_p1 }
   0x5   : > { %s739_s21 = sshll.u32 (!%p195_p2), %s981_s19, 1  ;;  %p242_p4 = scmp.lt.s32.totalorder (!%p195_p2), %s981_s19, 1 }
   0x6   : > { %198 = sbr.rel (%p195_p2) target bundleno = 208 (0xd0), region = 32  ;;  %p230_p3 = scmp.lt.s32.totalorder (!%p195_p2), %s739_s21, 3 }
   0xb   : > { %v903_v0 = vld [vmem:[%s1114_s1 + $0x38] sm:$0xff]  ;;  %v902_v4 = vld [vmem:[%s1114_s1 + $0x30] sm:$0xff]  ;;  %v901_v8 = vld [vmem:[%s1114_s1 + $0x28] sm:$0xff]  ;;  %s1120_s21 = smov (!%p230_p3, %s739_s21), 3  ;;  %v593_v49 = vlaneseq  ;;  %vm588_vm0 = vcmask 261120   ;;  %vm614_vm3 = vcmask 253952  }
   0xc   : > { %v911_v1 = vld [vmem:[%s1114_s1 + $0x78] sm:$0xff]  ;;  %532 = vmatpush.bf16.msra.mxu0 %v903_v0  ;;  %v910_v5 = vld [vmem:[%s1114_s1 + $0x70] sm:$0xff]  ;;  %v909_v9 = vld [vmem:[%s1114_s1 + $0x68] sm:$0xff]  ;;  %s891_s24 = sshll.u32 %s1120_s21, 4  ;;  %s743_s25 = sshll.u32 %s1120_s21, 3 }
   0xd   : > { %v919_v2 = vld [vmem:[%s1114_s1 + $0xb8] sm:$0xff]  ;;  %546 = vmatpush.bf16.msra.mxu1 %v911_v1  ;;  %v918_v6 = vld [vmem:[%s1114_s1 + $0xb0] sm:$0xff]  ;;  %v917_v10 = vld [vmem:[%s1114_s1 + $0xa8] sm:$0xff]  ;;  %s234_s6 = scalar_lea.vmem %s1113_s0, %s891_s24  ;;  %s888_s24 = sshll.u32 %s981_s19, 4  ;;  %v594_v54 = vshrl.u32 %v593_v49, 7 }
   0xe   : > { %v927_v3 = vld [vmem:[%s1114_s1 + $0xf8] sm:$0xff]  ;;  %560 = vmatpush.bf16.msra.mxu2 %v919_v2  ;;  %v926_v7 = vld [vmem:[%s1114_s1 + $0xf0] sm:$0xff]  ;;  %v925_v11 = vld [vmem:[%s1114_s1 + $0xe8] sm:$0xff]  ;;  %s592_s26 = ssub.s32 32, %s888_s24  ;;  %s240_s29 = scalar_lea.vmem %s1116_s3, %s743_s25 }
   0xf   : > { %574 = vmatpush.bf16.msra.mxu3 %v927_v3  ;;  %v900_v12 = vld [vmem:[%s1114_s1 + $0x20] sm:$0xff]  ;;  %v899_v16 = vld [vmem:[%s1114_s1 + $0x18] sm:$0xff]  ;;  %v898_v20 = vld [vmem:[%s1114_s1 + $0x10] sm:$0xff]  ;;  %v596_v56 = vstv %s592_s26  ;;  %v595_v59 = vadd.s32 8, %v594_v54  ;;  %s1122_s19 = smov (!%p242_p4, %s981_s19), 1 }
  0x10   : > { %533 = vmatpush.bf16.msra.mxu0 %v902_v4  ;;  %v908_v13 = vld [vmem:[%s1114_s1 + $0x60] sm:$0xff]  ;;  %v907_v17 = vld [vmem:[%s1114_s1 + $0x58] sm:$0xff]  ;;  %v906_v21 = vld [vmem:[%s1114_s1 + $0x50] sm:$0xff]  ;;  %vm597_vm1 = vcmp.lt.s32.totalorder %v594_v54, %v596_v56  ;;  %s247_s9 = scalar_lea.vmem %s1118_s5, %s1122_s19 }
  0x11   : > { %547 = vmatpush.bf16.msra.mxu1 %v910_v5  ;;  %v916_v14 = vld [vmem:[%s1114_s1 + $0xa0] sm:$0xff]  ;;  %v915_v18 = vld [vmem:[%s1114_s1 + $0x98] sm:$0xff]  ;;  %v914_v22 = vld [vmem:[%s1114_s1 + $0x90] sm:$0xff]  ;;  %vm598_vm2 = vcmp.lt.s32.totalorder %v595_v59, %v596_v56 }
  0x12   : > { %561 = vmatpush.bf16.msra.mxu2 %v918_v6  ;;  %v924_v15 = vld [vmem:[%s1114_s1 + $0xe0] sm:$0xff]  ;;  %v923_v19 = vld [vmem:[%s1114_s1 + $0xd8] sm:$0xff]  ;;  %v922_v23 = vld [vmem:[%s1114_s1 + $0xd0] sm:$0xff] }
  0x13   : > { %575 = vmatpush.bf16.msra.mxu3 %v926_v7  ;;  %v897_v24 = vld [vmem:[%s1114_s1 + $0x8] sm:$0xff]  ;;  %v896_v28 = vld [vmem:[%s1114_s1] sm:$0xff]  ;;  %v894_v33 = vld [vmem:[%s234_s6 + $0xc] sm:$0xf0] }
  0x14   : > { %534 = vmatpush.bf16.msra.mxu0 %v901_v8  ;;  %v905_v25 = vld [vmem:[%s1114_s1 + $0x48] sm:$0xff]  ;;  %v904_v29 = vld [vmem:[%s1114_s1 + $0x40] sm:$0xff]  ;;  %v748_v35 = vld [vmem:[%s234_s6 + $0x10] sm:$0xf0] }
  0x15   : > { %548 = vmatpush.bf16.msra.mxu1 %v909_v9  ;;  %v913_v26 = vld [vmem:[%s1114_s1 + $0x88] sm:$0xff]  ;;  %v912_v30 = vld [vmem:[%s1114_s1 + $0x80] sm:$0xff]  ;;  %v895_v37 = vld [vmem:[%s234_s6 + $0x14] sm:$0xf0] }
  0x16   : > { %562 = vmatpush.bf16.msra.mxu2 %v917_v10  ;;  %v921_v27 = vld [vmem:[%s1114_s1 + $0xc8] sm:$0xff]  ;;  %v920_v31 = vld [vmem:[%s1114_s1 + $0xc0] sm:$0xff]  ;;  %v756_v39 = vld [vmem:[%s234_s6 + $0x18] sm:$0xf0] }
  0x17   : > { %576 = vmatpush.bf16.msra.mxu3 %v925_v11  ;;  %v746_v32 = vld [vmem:[%s234_s6] sm:$0xf]  ;;  %v892_v34 = vld [vmem:[%s234_s6 + $0x4] sm:$0xf]  ;;  %v754_v36 = vld [vmem:[%s234_s6 + $0x8] sm:$0xf] }
  0x18   : > { %535 = vmatpush.bf16.msra.mxu0 %v900_v12  ;;  %v893_v38 = vld [vmem:[%s234_s6 + $0xc] sm:$0xf]  ;;  %v747_v40 = vor.u32 %v894_v33, %v746_v32  ;;  %v751_v41 = vor.u32 %v892_v34, %v748_v35  ;;  %v755_v42 = vor.u32 %v895_v37, %v754_v36  ;;  %v936_v44 = vld [vmem:[%s1115_s2] ss:$0 sm:$0xff]  ;;  %s244_s6 = scalar_lea.vmem %s1117_s4, %s1122_s19 }
  0x19   : > { %549 = vmatpush.bf16.msra.mxu1 %v908_v13  ;;  %v759_v43 = vor.u32 %v893_v38, %v756_v39 }
  0x1a   : > { %563 = vmatpush.bf16.msra.mxu2 %v916_v14 }
  0x1b   : > { %577 = vmatpush.bf16.msra.mxu3 %v924_v15 }
  0x1c   : > { %536 = vmatpush.bf16.msra.mxu0 %v899_v16 }
  0x1d   : > { %550 = vmatpush.bf16.msra.mxu1 %v907_v17 }
  0x1e   : > { %564 = vmatpush.bf16.msra.mxu2 %v915_v18 }
  0x1f   : > { %578 = vmatpush.bf16.msra.mxu3 %v923_v19 }
  0x20   : > { %537 = vmatpush.bf16.msra.mxu0 %v898_v20 }
  0x21   : > { %551 = vmatpush.bf16.msra.mxu1 %v906_v21 }
  0x22   : > { %565 = vmatpush.bf16.msra.mxu2 %v914_v22 }
  0x23   : > { %579 = vmatpush.bf16.msra.mxu3 %v922_v23 }
  0x24   : > { %538 = vmatpush.bf16.msra.mxu0 %v897_v24 }
  0x25   : > { %552 = vmatpush.bf16.msra.mxu1 %v905_v25 }
  0x26   : > { %566 = vmatpush.bf16.msra.mxu2 %v913_v26 }
  0x27   : > { %580 = vmatpush.bf16.msra.mxu3 %v921_v27 }
  0x28   : > { %539 = vmatpush.bf16.msra.mxu0 %v896_v28 }
  0x29   : > { %553 = vmatpush.bf16.msra.mxu1 %v904_v29 }
  0x2a   : > { %567 = vmatpush.bf16.msra.mxu2 %v912_v30 }
  0x2b   : > { %581 = vmatpush.bf16.msra.mxu3 %v920_v31  ;;  %540 = vmatmul.bf16.vlgmr.msra.gmra.mxu0 %v747_v40 }
  0x2c   : > { %554 = vmatmul.bf16.vlgmr.msra.gmra.mxu1 %v751_v41 }
  0x2d   : > { %568 = vmatmul.bf16.vlgmr.msra.gmra.mxu2 %v755_v42 }
  0x2e   : > { %582 = vmatmul.bf16.vlgmr.msra.gmra.mxu3 %v759_v43 }
  0xa8   : > { %v541_v45 = vpop.f32.mrf.mxu0 }
  0xa9   : > { %v542_v46 = vadd.f32 %v936_v44, %v541_v45  ;;  %v555_v47 = vpop.f32.mrf.mxu1 }
  0xab   : > { %v556_v48 = vadd.f32 %v555_v47, %v542_v46 }
  0xb0   : > { %v569_v50 = vpop.f32.mrf.mxu2  ;;  %v543_v53 = vpop.f32.mrf.mxu0 }
  0xb1   : > { %v583_v51 = vpop.f32.mrf.mxu3  ;;  %v570_v52 = vadd.f32 %v569_v50, %v556_v48  ;;  %v544_v57 = vadd.f32 %v936_v44, %v543_v53  ;;  %v557_v58 = vpop.f32.mrf.mxu1 }
  0xb3   : > { %v584_v55 = vadd.f32 %v583_v51, %v570_v52  ;;  %v558_v60 = vadd.f32 %v557_v58, %v544_v57 }
  0xb5   : > { %589 = vst.msk [vmem:[%s240_s29] sm:$0xff] %vm588_vm0, %v584_v55  ;;  %v603_v62 = vsel %vm597_vm1, %v584_v55, 0.0 }
  0xb6   : > { %v616_v2 = vmul.f32 %v603_v62, %v603_v62  ;;  %v605_v4 = vsel %vm588_vm0, %v603_v62, 0.0 }
  0xb8   : > { %v571_v61 = vpop.f32.mrf.mxu2  ;;  %v618_v8 = vsel %vm588_vm0, %v616_v2, 0.0 }
  0xb9   : > { %v572_v63 = vadd.f32 %v571_v61, %v558_v60  ;;  %v585_v0 = vpop.f32.mrf.mxu3 }
  0xbb   : > { %v586_v1 = vadd.f32 %v585_v0, %v572_v63 }
  0xbd   : > { %590 = vst.msk [vmem:[%s240_s29 + $0x8] sm:$0xff] %vm588_vm0, %v586_v1  ;;  %v604_v3 = vsel %vm598_vm2, %v586_v1, 0.0 }
  0xbe   : > { %v606_v5 = vsel %vm588_vm0, %v604_v3, 0.0  ;;  %v617_v6 = vmul.f32 %v604_v3, %v604_v3 }
  0xbf   : > { %v607_v7 = vadd.f32 %v606_v5, %v605_v4 }
  0xc0   : > { %v619_v9 = vsel %vm588_vm0, %v617_v6, 0.0 }
  0xc1   : > { %v608_v10 = vrot.slane %v607_v7, 4  ;;  %v620_v11 = vadd.f32 %v619_v9, %v618_v8 }
  0xc3   : > { %v609_v12 = vadd.f32 %v608_v10, %v607_v7  ;;  %v621_v13 = vrot.slane %v620_v11, 4 }
  0xc5   : > { %v610_v14 = vrot.slane %v609_v12, 2  ;;  %v622_v15 = vadd.f32 %v621_v13, %v620_v11 }
  0xc7   : > { %v611_v16 = vadd.f32 %v610_v14, %v609_v12  ;;  %v623_v17 = vrot.slane %v622_v15, 2 }
  0xc9   : > { %v612_v18 = vrot.slane %v611_v16, 1  ;;  %v624_v19 = vadd.f32 %v623_v17, %v622_v15 }
  0xcb   : > { %v613_v20 = vadd.f32 %v612_v18, %v611_v16  ;;  %v625_v21 = vrot.slane %v624_v19, 1 }
  0xcd   : > { %615 = vst.msk [vmem:[%s244_s6] sm:$0x1] %vm614_vm3, %v613_v20  ;;  %v626_v22 = vadd.f32 %v625_v21, %v624_v19 }
  0xcf   : > { %627 = vst.msk [vmem:[%s247_s9] sm:$0x1] %vm614_vm3, %v626_v22 }
  0xd0 PF: > { %s16_s18 = sadd.s32 1, %s943_s18  }
  0xd1   : > { %p13_p5 = scmp.ge.s32.totalorder %s16_s18, 4  }
  0xd3   :  { %15 = sbr.rel (!%p13_p5) target bundleno = 1 (0x1), region = 86 }

// kernel: encoder_forward.13
= control target key start
LH: loop header
LB: loop body
LE: loop exit
PB: predicated region body
PF: predicated region fallthrough
CT: control target
= control target key end

     0   :  { %s773_s18 = smov 0   ;;  %s870_s0 = inlined_call_operand.vmem [shape: bf16[32,288], index: 0, kind: input, shape index: {}]   ;;  %s871_s1 = inlined_call_operand.vmem [shape: bf16[288,32], index: 1, kind: input, shape index: {}]   ;;  %s872_s2 = inlined_call_operand.vmem [shape: f32[1,32], index: 2, kind: input, shape index: {}]   ;;  %s873_s3 = inlined_call_operand.vmem [shape: f32[32,32], index: 3, kind: output, shape index: {0}]   ;;  %s874_s4 = inlined_call_operand.vmem [shape: f32[2,1,32], index: 4, kind: output, shape index: {1}]   ;;  %s875_s5 = inlined_call_operand.vmem [shape: f32[2,1,32], index: 5, kind: output, shape index: {2}]  }
   0x1 LB: > { %s779_s19 = sadd.s32 4294967295, %s741_s18   ;;  %p611_p0 = scmp.ge.s32.totalorder %s741_s18, 1  ;;  %s741_s18 = sphi %s773_s18, %s16_s18  }
   0x2   : > { %p194_p1 = scmp.lt.s32.totalorder %s741_s18, 3 }
   0x4   : > { %p195_p2 = pnand %p611_p0, %p194_p1 }
   0x5   : > { %s612_s24 = sshll.u32 (!%p195_p2), %s779_s19, 1  ;;  %s701_s17 = sshll.u32 (!%p195_p2), %s779_s19, 4 }
   0x6   : > { %198 = sbr.rel (%p195_p2) target bundleno = 202 (0xca), region = 32  ;;  %p230_p3 = scmp.lt.s32.totalorder (!%p195_p2), %s612_s24, 3 }
   0x7   : > { %s465_s21 = ssub.s32 (!%p195_p2), 32, %s701_s17  ;;  %p242_p4 = scmp.lt.s32.totalorder (!%p195_p2), %s779_s19, 1 }
   0xb   : > { %v714_v0 = vld [vmem:[%s871_s1 + $0x38] sm:$0xff]  ;;  %v713_v2 = vld [vmem:[%s871_s1 + $0x30] sm:$0xff]  ;;  %v724_v4 = vld [vmem:[%s871_s1 + $0x88] sm:$0xff]  ;;  %s877_s24 = smov (!%p230_p3, %s612_s24), 3  ;;  %vm416_vm0 = vcmask 261120   ;;  %v466_v30 = vlaneseq  ;;  %v469_v36 = vstv %s465_s21  ;;  %s879_s19 = smov (!%p242_p4, %s779_s19), 1 }
   0xc   : > { %v722_v1 = vld [vmem:[%s871_s1 + $0x78] sm:$0xff]  ;;  %420 = vmatpush.bf16.msra.mxu0 %v714_v0  ;;  %v721_v3 = vld [vmem:[%s871_s1 + $0x70] sm:$0xff]  ;;  %454 = vmatpush.bf16.msra.mxu2 %v724_v4  ;;  %v723_v5 = vld [vmem:[%s871_s1 + $0x80] sm:$0xff]  ;;  %s725_s8 = smul.u32 12, %s877_s24  ;;  %s615_s20 = sshll.u32 %s877_s24, 3  ;;  %vm487_vm3 = vcmask 253952  }
   0xd   : > { %434 = vmatpush.bf16.msra.mxu1 %v722_v1  ;;  %v712_v6 = vld [vmem:[%s871_s1 + $0x28] sm:$0xff]  ;;  %v711_v11 = vld [vmem:[%s871_s1 + $0x20] sm:$0xff]  ;;  %v710_v13 = vld [vmem:[%s871_s1 + $0x18] sm:$0xff]  ;;  %s240_s23 = scalar_lea.vmem %s873_s3, %s615_s20  ;;  %v467_v34 = vshrl.u32 %v466_v30, 7  ;;  %s244_s26 = scalar_lea.vmem %s874_s4, %s879_s19 }
   0xe   : > { %v720_v7 = vld [vmem:[%s871_s1 + $0x68] sm:$0xff]  ;;  %s234_s15 = scalar_lea.vmem %s870_s0, %s725_s8  ;;  %v719_v12 = vld [vmem:[%s871_s1 + $0x60] sm:$0xff]  ;;  %v718_v14 = vld [vmem:[%s871_s1 + $0x58] sm:$0xff]  ;;  %s247_s29 = scalar_lea.vmem %s875_s5, %s879_s19 }
   0xf   : > { %v626_v8 = vld [vmem:[%s234_s15 + $0x8] sm:$0xf]  ;;  %v706_v9 = vld [vmem:[%s234_s15 + $0x10] sm:$0xf0]  ;;  %v707_v19 = vld [vmem:[%s871_s1] sm:$0xff]  ;;  %vm470_vm1 = vcmp.lt.s32.totalorder %v467_v34, %v469_v36  ;;  %v468_v38 = vadd.s32 8, %v467_v34 }
  0x10   : > { %421 = vmatpush.bf16.msra.mxu0 %v713_v2  ;;  %455 = vmatpush.bf16.msra.mxu2 %v723_v5  ;;  %v627_v10 = vor.u32 %v706_v9, %v626_v8  ;;  %v709_v15 = vld [vmem:[%s871_s1 + $0x10] sm:$0xff]  ;;  %v708_v17 = vld [vmem:[%s871_s1 + $0x8] sm:$0xff]  ;;  %v715_v20 = vld [vmem:[%s871_s1 + $0x40] sm:$0xff] }
  0x11   : > { %435 = vmatpush.bf16.msra.mxu1 %v721_v3  ;;  %v717_v16 = vld [vmem:[%s871_s1 + $0x50] sm:$0xff]  ;;  %v716_v18 = vld [vmem:[%s871_s1 + $0x48] sm:$0xff]  ;;  %v618_v21 = vld [vmem:[%s234_s15] sm:$0xf]  ;;  %vm471_vm2 = vcmp.lt.s32.totalorder %v468_v38, %v469_v36 }
  0x12   : > { %v705_v22 = vld [vmem:[%s234_s15 + $0x8] sm:$0xf0]  ;;  %v704_v23 = vld [vmem:[%s234_s15 + $0x4] sm:$0xf]  ;;  %v620_v24 = vld [vmem:[%s234_s15 + $0xc] sm:$0xf0] }
  0x13   : > { %700 = vmatmul.msk.bf16.vlgmr.msra.gmra.mxu2 %vm416_vm0, %v627_v10  ;;  %v619_v25 = vor.u32 %v705_v22, %v618_v21  ;;  %v623_v26 = vor.u32 %v704_v23, %v620_v24  ;;  %v734_v27 = vld [vmem:[%s872_s2] ss:$0 sm:$0xff] }
  0x14   : > { %422 = vmatpush.bf16.msra.mxu0 %v712_v6 }
  0x15   : > { %436 = vmatpush.bf16.msra.mxu1 %v720_v7 }
  0x18   : > { %423 = vmatpush.bf16.msra.mxu0 %v711_v11 }
  0x19   : > { %437 = vmatpush.bf16.msra.mxu1 %v719_v12 }
  0x1c   : > { %424 = vmatpush.bf16.msra.mxu0 %v710_v13 }
  0x1d   : > { %438 = vmatpush.bf16.msra.mxu1 %v718_v14 }
  0x20   : > { %425 = vmatpush.bf16.msra.mxu0 %v709_v15 }
  0x21   : > { %439 = vmatpush.bf16.msra.mxu1 %v717_v16 }
  0x24   : > { %426 = vmatpush.bf16.msra.mxu0 %v708_v17 }
  0x25   : > { %440 = vmatpush.bf16.msra.mxu1 %v716_v18 }
  0x28   : > { %427 = vmatpush.bf16.msra.mxu0 %v707_v19 }
  0x29   : > { %441 = vmatpush.bf16.msra.mxu1 %v715_v20 }
  0x2b   : > { %428 = vmatmul.bf16.vlgmr.msra.gmra.mxu0 %v619_v25 }
  0x2c   : > { %442 = vmatmul.bf16.vlgmr.msra.gmra.mxu1 %v623_v26 }
  0x96   : > { %v457_v32 = vpop.f32.mrf.mxu2 }
  0x9e   : > { %v459_v43 = vpop.f32.mrf.mxu2 }
  0xa8   : > { %v429_v28 = vpop.f32.mrf.mxu0 }
  0xa9   : > { %v443_v29 = vpop.f32.mrf.mxu1  ;;  %v430_v31 = vadd.f32 %v734_v27, %v429_v28 }
  0xab   : > { %v444_v33 = vadd.f32 %v443_v29, %v430_v31 }
  0xad   : > { %v458_v35 = vadd.f32 %v457_v32, %v444_v33 }
  0xaf   : > { %462 = vst.msk [vmem:[%s240_s23] sm:$0xff] %vm416_vm0, %v458_v35  ;;  %v476_v41 = vsel %vm470_vm1, %v458_v35, 0.0 }
  0xb0   : > { %v431_v37 = vpop.f32.mrf.mxu0  ;;  %v489_v45 = vmul.f32 %v476_v41, %v476_v41  ;;  %v478_v47 = vsel %vm416_vm0, %v476_v41, 0.0 }
  0xb1   : > { %v432_v39 = vadd.f32 %v734_v27, %v431_v37  ;;  %v445_v40 = vpop.f32.mrf.mxu1 }
  0xb2   : > { %v491_v51 = vsel %vm416_vm0, %v489_v45, 0.0 }
  0xb3   : > { %v446_v42 = vadd.f32 %v445_v40, %v432_v39 }
  0xb5   : > { %v460_v44 = vadd.f32 %v459_v43, %v446_v42 }
  0xb7   : > { %463 = vst.msk [vmem:[%s240_s23 + $0x8] sm:$0xff] %vm416_vm0, %v460_v44  ;;  %v477_v46 = vsel %vm471_vm2, %v460_v44, 0.0 }
  0xb8   : > { %v479_v48 = vsel %vm416_vm0, %v477_v46, 0.0  ;;  %v490_v49 = vmul.f32 %v477_v46, %v477_v46 }
  0xb9   : > { %v480_v50 = vadd.f32 %v479_v48, %v478_v47 }
  0xba   : > { %v492_v52 = vsel %vm416_vm0, %v490_v49, 0.0 }
  0xbb   : > { %v481_v53 = vrot.slane %v480_v50, 4  ;;  %v493_v54 = vadd.f32 %v492_v52, %v491_v51 }
  0xbd   : > { %v482_v55 = vadd.f32 %v481_v53, %v480_v50  ;;  %v494_v56 = vrot.slane %v493_v54, 4 }
  0xbf   : > { %v483_v57 = vrot.slane %v482_v55, 2  ;;  %v495_v58 = vadd.f32 %v494_v56, %v493_v54 }
  0xc1   : > { %v484_v59 = vadd.f32 %v483_v57, %v482_v55  ;;  %v496_v60 = vrot.slane %v495_v58, 2 }
  0xc3   : > { %v485_v61 = vrot.slane %v484_v59, 1  ;;  %v497_v62 = vadd.f32 %v496_v60, %v495_v58 }
  0xc5   : > { %v486_v63 = vadd.f32 %v485_v61, %v484_v59  ;;  %v498_v0 = vrot.slane %v497_v62, 1 }
  0xc7   : > { %488 = vst.msk [vmem:[%s244_s26] sm:$0x1] %vm487_vm3, %v486_v63  ;;  %v499_v1 = vadd.f32 %v498_v0, %v497_v62 }
  0xc9   : > { %500 = vst.msk [vmem:[%s247_s29] sm:$0x1] %vm487_vm3, %v499_v1 }
  0xca PF: > { %s16_s18 = sadd.s32 1, %s741_s18  }
  0xcb   : > { %p13_p5 = scmp.ge.s32.totalorder %s16_s18, 4  }
  0xcd   :  { %15 = sbr.rel (!%p13_p5) target bundleno = 1 (0x1), region = 86 }

// kernel: encoder_forward.14
= control target key start
LH: loop header
LB: loop body
LE: loop exit
PB: predicated region body
PF: predicated region fallthrough
CT: control target
= control target key end

     0   :  { %s654_s27 = smov 0   ;;  %s708_s0 = inlined_call_operand.vmem [shape: f32[32,32], index: 0, kind: input, shape index: {}]   ;;  %s709_s1 = inlined_call_operand.vmem [shape: bf16[32,32], index: 1, kind: input, shape index: {}]   ;;  %s710_s2 = inlined_call_operand.vmem [shape: f32[1,32], index: 2, kind: input, shape index: {}]   ;;  %s711_s3 = inlined_call_operand.vmem [shape: f32[1,32], index: 3, kind: input, shape index: {}]   ;;  %s712_s4 = inlined_call_operand.vmem [shape: f32[1,32], index: 4, kind: input, shape index: {}]   ;;  %s713_s5 = inlined_call_operand.vmem [shape: f32[32,32], index: 5, kind: input, shape index: {}]   ;;  %s714_s6 = inlined_call_operand.vmem [shape: f32[32,32], index: 6, kind: output, shape index: {0}]   ;;  %s715_s7 = inlined_call_operand.vmem [shape: f32[2,1,32], index: 7, kind: output, shape index: {1}]   ;;  %s716_s8 = inlined_call_operand.vmem [shape: f32[2,1,32], index: 8, kind: output, shape index: {2}]  }
   0x1 LB: > { %s660_s28 = sadd.s32 4294967295, %s607_s27   ;;  %p569_p0 = scmp.ge.s32.totalorder %s607_s27, 1  ;;  %s607_s27 = sphi %s654_s27, %s19_s27  }
   0x2   : > { %p279_p1 = scmp.lt.s32.totalorder %s607_s27, 3 }
   0x4   : > { %p280_p2 = pnand %p569_p0, %p279_p1 }
   0x5   : > { %s570_s9 = sshll.u32 (!%p280_p2), %s660_s28, 1  ;;  %s585_s25 = sshll.u32 (!%p280_p2), %s660_s28, 4 }
   0x6   : > { %283 = sbr.rel (%p280_p2) target bundleno = 180 (0xb4), region = 44  ;;  %p325_p3 = scmp.lt.s32.totalorder (!%p280_p2), %s570_s9, 3 }
   0x7   : > { %s411_s26 = ssub.s32 (!%p280_p2), 32, %s585_s25  ;;  %p342_p4 = scmp.lt.s32.totalorder (!%p280_p2), %s660_s28, 1 }
   0xb   : > { %v589_v0 = vld [vmem:[%s709_s1 + $0x8] sm:$0xff]  ;;  %v588_v1 = vld [vmem:[%s709_s1] sm:$0xff]  ;;  %s718_s9 = smov (!%p325_p3, %s570_s9), 3  ;;  %vm386_vm0 = vcmask 261120   ;;  %v412_v14 = vlaneseq  ;;  %v415_v20 = vstv %s411_s26  ;;  %s720_s28 = smov (!%p342_p4, %s660_s28), 1  ;;  %vm433_vm3 = vcmask 253952  }
   0xc   : > { %396 = vmatpush.bf16.msra.mxu0 %v589_v0  ;;  %v598_v2 = vld [vmem:[%s711_s3] ss:$0 sm:$0xff]  ;;  %s571_s14 = sshll.u32 %s718_s9, 3  ;;  %s344_s12 = scalar_lea.vmem %s715_s7, %s720_s28 }
   0xd   : > { %s328_s17 = scalar_lea.vmem %s708_s0, %s571_s14  ;;  %v599_v3 = vld [vmem:[%s712_s4] ss:$0 sm:$0xff]  ;;  %s334_s22 = scalar_lea.vmem %s713_s5, %s571_s14  ;;  %v413_v18 = vshrl.u32 %v412_v14, 7 }
   0xe   : > { %v349_v4 = vld [vmem:[%s328_s17] sm:$0xff]  ;;  %v350_v5 = vld [vmem:[%s328_s17 + $0x8] sm:$0xff]  ;;  %s340_s9 = scalar_lea.vmem %s714_s6, %s571_s14  ;;  %s347_s15 = scalar_lea.vmem %s716_s8, %s720_s28 }
   0xf   : > { %v355_v6 = vmul.f32 %v598_v2, %v349_v4  ;;  %v356_v7 = vmul.f32 %v598_v2, %v350_v5  ;;  %v600_v13 = vld [vmem:[%s710_s2] ss:$0 sm:$0xff]  ;;  %vm416_vm1 = vcmp.lt.s32.totalorder %v413_v18, %v415_v20  ;;  %v414_v21 = vadd.s32 8, %v413_v18  ;;  %v405_v23 = vld [vmem:[%s334_s22 + $0x8] sm:$0xff] }
  0x10   : > { %397 = vmatpush.bf16.msra.mxu0 %v588_v1  ;;  %v404_v16 = vld [vmem:[%s334_s22] sm:$0xff] }
  0x11   : > { %v361_v8 = vadd.f32 %v599_v3, %v355_v6  ;;  %v362_v9 = vadd.f32 %v599_v3, %v356_v7  ;;  %vm417_vm2 = vcmp.lt.s32.totalorder %v414_v21, %v415_v20 }
  0x13   : > { %v363_v10 = vmax.f32 %v361_v8, 0.0  ;;  %v364_v11 = vmax.f32 %v362_v9, 0.0 }
  0x15   : > { %v365_v12 = vpack.c.bf16 %v364_v11, %v363_v10 }
  0x17   : > { %584 = vmatmul.msk.bf16.vlgmr.msra.gmra.mxu0 %vm386_vm0, %v365_v12 }
  0x94   : > { %v399_v15 = vpop.f32.mrf.mxu0 }
  0x95   : > { %v400_v17 = vadd.f32 %v600_v13, %v399_v15 }
  0x97   : > { %v406_v19 = vadd.f32 %v404_v16, %v400_v17 }
  0x99   : > { %408 = vst.msk [vmem:[%s340_s9] sm:$0xff] %vm386_vm0, %v406_v19  ;;  %v422_v24 = vsel %vm416_vm1, %v406_v19, 0.0 }
  0x9a   : > { %v435_v27 = vmul.f32 %v422_v24, %v422_v24  ;;  %v424_v29 = vsel %vm386_vm0, %v422_v24, 0.0 }
  0x9c   : > { %v401_v22 = vpop.f32.mrf.mxu0  ;;  %v437_v33 = vsel %vm386_vm0, %v435_v27, 0.0 }
  0x9d   : > { %v402_v25 = vadd.f32 %v600_v13, %v401_v22 }
  0x9f   : > { %v407_v26 = vadd.f32 %v405_v23, %v402_v25 }
  0xa1   : > { %409 = vst.msk [vmem:[%s340_s9 + $0x8] sm:$0xff] %vm386_vm0, %v407_v26  ;;  %v423_v28 = vsel %vm417_vm2, %v407_v26, 0.0 }
  0xa2   : > { %v425_v30 = vsel %vm386_vm0, %v423_v28, 0.0  ;;  %v436_v31 = vmul.f32 %v423_v28, %v423_v28 }
  0xa3   : > { %v426_v32 = vadd.f32 %v425_v30, %v424_v29 }
  0xa4   : > { %v438_v34 = vsel %vm386_vm0, %v436_v31, 0.0 }
  0xa5   : > { %v427_v35 = vrot.slane %v426_v32, 4  ;;  %v439_v36 = vadd.f32 %v438_v34, %v437_v33 }
  0xa7   : > { %v428_v37 = vadd.f32 %v427_v35, %v426_v32  ;;  %v440_v38 = vrot.slane %v439_v36, 4 }
  0xa9   : > { %v429_v39 = vrot.slane %v428_v37, 2  ;;  %v441_v40 = vadd.f32 %v440_v38, %v439_v36 }
  0xab   : > { %v430_v41 = vadd.f32 %v429_v39, %v428_v37  ;;  %v442_v42 = vrot.slane %v441_v40, 2 }
  0xad   : > { %v431_v43 = vrot.slane %v430_v41, 1  ;;  %v443_v44 = vadd.f32 %v442_v42, %v441_v40 }
  0xaf   : > { %v432_v45 = vadd.f32 %v431_v43, %v430_v41  ;;  %v444_v46 = vrot.slane %v443_v44, 1 }
  0xb1   : > { %434 = vst.msk [vmem:[%s344_s12] sm:$0x1] %vm433_vm3, %v432_v45  ;;  %v445_v47 = vadd.f32 %v444_v46, %v443_v44 }
  0xb3   : > { %446 = vst.msk [vmem:[%s347_s15] sm:$0x1] %vm433_vm3, %v445_v47 }
  0xb4 PF: > { %s19_s27 = sadd.s32 1, %s607_s27  }
  0xb5   : > { %p16_p5 = scmp.ge.s32.totalorder %s19_s27, 4  }
  0xb7   :  { %18 = sbr.rel (!%p16_p5) target bundleno = 1 (0x1), region = 101 }

// kernel: encoder_forward.17
= control target key start
LH: loop header
LB: loop body
LE: loop exit
PB: predicated region body
PF: predicated region fallthrough
CT: control target
= control target key end

     0   :  { %11 = vsyncpa [#allocation3], 0  ;;  %s703_s0 = inlined_call_operand.vmem [shape: f32[32,32], index: 0, kind: input, shape index: {}]   ;;  %s704_s1 = inlined_call_operand.vmem [shape: bf16[32,32], index: 1, kind: input, shape index: {}]   ;;  %s705_s2 = inlined_call_operand.vmem [shape: f32[1,32], index: 2, kind: input, shape index: {}]   ;;  %s706_s3 = inlined_call_operand.vmem [shape: f32[1,32], index: 3, kind: input, shape index: {}]   ;;  %s707_s4 = inlined_call_operand.vmem [shape: f32[1,32], index: 4, kind: input, shape index: {}]   ;;  %s708_s5 = inlined_call_operand.vmem [shape: f32[32,32], index: 5, kind: input, shape index: {}]   ;;  %s709_s6 = inlined_call_operand.hbm [shape: f32[32,32], index: 6, kind: output, shape index: {}]  }
   0x1   :  { %13 = vsyncpa [#allocation3 + $0x1], 0  ;;  %s598_s21 = smov 0   ;;  %s600_s22 = smov 0  }
   0x2   :  { %s602_s23 = smov 0   ;;  %s604_s24 = smov 0  }
   0x3 LB: > { %s619_s25 = sadd.s32 4294967295, %s559_s24   ;;  %s427_s26 = sadd.s32 4294967294, %s559_s24   ;;  %s559_s24 = sphi %s604_s24, %s715_s24   ;;  %s555_s23 = sphi %s602_s23, %s714_s23   ;;  %s551_s22 = sphi %s600_s22, %s713_s22   ;;  %s547_s21 = sphi %s598_s21, %s712_s21  }
   0x4   : > { %s623_s27 = sadd.s32 1, %s559_s24   ;;  %s162_s28 = sadd.s32 1, %s555_s23 }
   0x5   : > { %s159_s29 = ssub.s32 %s559_s24, %s623_s27  ;;  %p172_p0 = scmp.ne.s32.totalorder %s555_s23, %s551_s22 }
   0x6   : > { %p160_p1 = scmp.eq.s32.totalorder %s159_s29, 0  ;;  %p173_p2 = scmp.eq.s32.totalorder %s619_s25, 1 }
   0x7   : > { %p178_p3 = scmp.ne.s32.totalorder %s551_s22, %s547_s21  ;;  %p179_p4 = scmp.eq.s32.totalorder %s427_s26, 1 }
   0x8   : > { %s634_s30 = scalar_select %p160_p1, %s555_s23, %s162_s28  }
   0x9   : > { %p636_p5 = por %p173_p2, %p172_p0  ;;  %p640_p6 = por %p179_p4, %p178_p3 }
   0xa   : > { %p430_p7 = scmp.ge.s32.totalorder %s559_s24, 1  ;;  %p227_p8 = scmp.lt.s32.totalorder %s559_s24, 3 }
   0xc   : > { %p228_p9 = pnand %p430_p7, %p227_p8 }
   0xd   : > { %s432_s11 = sshll.u32 (!%p228_p9), %s619_s25, 1  ;;  %s259_s28 = sand.u32 (!%p228_p9), 1, %s551_s22  }
   0xe   : > { %231 = sbr.rel (%p228_p9) target bundleno = 173 (0xad), region = 44  ;;  %p263_p10 = scmp.lt.s32.totalorder (!%p228_p9), %s432_s11, 3 }
   0xf   : > { %s431_s13 = sshll.u32 (!%p228_p9), %s259_s28, 4  ;;  %s452_s14 = sshll.u32 (!%p228_p9), %s619_s25, 4 }
  0x10   : > { %s349_s18 = scalar_lea.hbm (!%p228_p9), %s709_s6, %s452_s14  ;;  %s338_s25 = scalar_lea.sflag (!%p228_p9), [#allocation3], %s259_s28 }
  0x11   : > { %s517_s12 = scalar_lea.hbm (!%p228_p9), %s709_s6, 32 }
  0x13   : > { %v451_v0 = vld [vmem:[%s704_s1 + $0x8] sm:$0xff]  ;;  %v450_v1 = vld [vmem:[%s704_s1] sm:$0xff]  ;;  %s717_s11 = smov (!%p263_p10, %s432_s11), 3  ;;  %vm313_vm0 = vcmask 261120  }
  0x14   : > { %323 = vmatpush.bf16.msra.mxu0 %v451_v0  ;;  %v494_v2 = vld [vmem:[%s706_s3] ss:$0 sm:$0xff]  ;;  %s433_s16 = sshll.u32 %s717_s11, 3 }
  0x15   : > { %s266_s19 = scalar_lea.vmem %s703_s0, %s433_s16  ;;  %v495_v3 = vld [vmem:[%s707_s4] ss:$0 sm:$0xff]  ;;  %s272_s10 = scalar_lea.vmem %s708_s5, %s433_s16 }
  0x16   : > { %v276_v4 = vld [vmem:[%s266_s19] sm:$0xff]  ;;  %v277_v5 = vld [vmem:[%s266_s19 + $0x8] sm:$0xff]  ;;  %s261_s19 = scalar_lea.vmem [#allocation2], %s431_s13  ;;  %s352_s16 = sshll.u32 %s349_s18, 4  ;;  %s353_s16 = int_to_ptr.hbm [resolvable:$true] %s352_s16 }
  0x17   : > { %v282_v6 = vmul.f32 %v494_v2, %v276_v4  ;;  %v283_v7 = vmul.f32 %v494_v2, %v277_v5  ;;  %v496_v13 = vld [vmem:[%s705_s2] ss:$0 sm:$0xff]  ;;  %s350_s20 = sshll.u32 %s261_s19, 4  ;;  %v332_v19 = vld [vmem:[%s272_s10 + $0x8] sm:$0xff]  ;;  %s511_s26 = sshra.s32 %s353_s16, 4  ;;  %s351_s20 = int_to_ptr.vmem [resolvable:$true] %s350_s20  ;;  %s512_s26 = int_to_ptr.hbm [resolvable:$true] %s511_s26 }
  0x18   : > { %324 = vmatpush.bf16.msra.mxu0 %v450_v1  ;;  %v331_v15 = vld [vmem:[%s272_s10] sm:$0xff]  ;;  %s513_s29 = scalar_lea.hbm %s512_s26, 16  ;;  %p518_p0 = scmp.lt.s32.totalorder %s512_s26, %s709_s6 }
  0x19   : > { %v288_v8 = vadd.f32 %v495_v3, %v282_v6  ;;  %v289_v9 = vadd.f32 %v495_v3, %v283_v7  ;;  %p514_p11 = scmp.ne.s32.totalorder %s512_s26, %s513_s29  ;;  %p519_p1 = scmp.lt.s32.totalorder %s517_s12, %s513_s29 }
  0x1b   : > { %v290_v10 = vmax.f32 %v288_v8, 0.0  ;;  %v291_v11 = vmax.f32 %v289_v9, 0.0  ;;  %p515_p12 = pnand %p514_p11, %p636_p5  ;;  %p520_p2 = por %p519_p1, %p518_p0 }
  0x1d   : > { %v292_v12 = vpack.c.bf16 %v291_v11, %v290_v10  ;;  %p516_p13 = pneg %p515_p12 }
  0x1f   : > { %444 = vmatmul.msk.bf16.vlgmr.msra.gmra.mxu0 %vm313_vm0, %v292_v12  ;;  %p521_p3 = pnand %p520_p2, %p516_p13 }
  0x9c   : > { %v326_v14 = vpop.f32.mrf.mxu0 }
  0x9d   : > { %v327_v16 = vadd.f32 %v496_v13, %v326_v14 }
  0x9f   : > { %v333_v17 = vadd.f32 %v331_v15, %v327_v16 }
  0xa1   : > { %335 = vst.msk [vmem:[%s261_s19] sm:$0xff] %vm313_vm0, %v333_v17 }
  0xa4   : > { %v328_v18 = vpop.f32.mrf.mxu0 }
  0xa5   : > { %v329_v20 = vadd.f32 %v496_v13, %v328_v18 }
  0xa7   : > { %v334_v21 = vadd.f32 %v332_v19, %v329_v20 }
  0xa9   : > { %336 = vst.msk [vmem:[%s261_s19 + $0x8] sm:$0xff] %vm313_vm0, %v334_v21 }
  0xaa   : > { %524 = shalt.err (!%p521_p3)
}
  0xab   : > { %s561_s28 = smov 128   ;;  %s562_s14 = smov 8  }
  0xac   : > { %453 = dma.vmem_to_hbm [thread:$0]  (%p636_p5), %s351_s20, 256, %s353_s16, %s338_s25, %s561_s28, %s561_s28, %s562_s14  }
  0xad PF: > { %p459_p4 = scmp.ge.s32.totalorder %s559_s24, 2  ;;  %s367_s15 = sand.u32 1, %s547_s21  }
  0xae   : > { %s368_s17 = scalar_lea.sflag [#allocation3], %s367_s15 }
  0xaf   : > { %p456_p7 = pnand %p459_p4, %p640_p6 }
  0xb1   : > { %p457_p8 = pneg %p456_p7 }
  0xb3   : > { %542 = dma.done.wait (%p457_p8), %s368_s17, 256  }
  0xb4   : > { %544 = vsyncadd (%p457_p8), %s368_s17, 4294967040  ;;  %p16_p9 = scmp.ge.s32.totalorder %s623_s27, 4   ;;  %s712_s21 = smov %s551_s22 }
  0xb5   : > { %s713_s22 = smov %s555_s23  ;;  %s714_s23 = smov %s634_s30 }
  0xb6   : > { %s715_s24 = smov %s623_s27  ;;  %18 = sbr.rel (!%p16_p9) target bundleno = 3 (0x3), region = 82 }
  0xbb   :  { %374 = vsyncpa [#allocation3], 1 }
  0xbc   :  { %376 = vsyncpa [#allocation3 + $0x1], 1 }

</bundles_post_ra>
